<compile_context>
chip_gen: v7x
topology: tpu7x:2x2x1
jax: 0.10.0
libtpu: 0.0.40
codegen_flags: <defaults>
</compile_context>

<pallas_src>
import numpy as np
import jax
import jax.numpy as jnp
from jax import lax
from jax.experimental import pallas as pl
from jax.experimental.pallas import tpu as pltpu

_TAPS = [(-1, -1), (-1, 0), (-1, 1),
         (0, -1),  (0, 0),  (0, 1),
         (1, -1),  (1, 0),  (1, 1)]


def _rup(x, m):
    return ((x + m - 1) // m) * m


def up_forward(x1_nchw, x2_nchw, params, eps=1e-5, compute_dtype=jnp.bfloat16):
    """Forward pass of `Up` (bilinear=False). NCHW in, NCHW out.

    `compute_dtype` is the MXU operand dtype (accumulation is always f32).  bf16 is the
    fast path on v5e/v6e/v7x; pass jnp.float32 for bit-near-exact results.
    """
    f32 = jnp.float32
    B, Cin, H1, W1 = x1_nchw.shape
    B2, C2, H2, W2 = x2_nchw.shape
    assert B == B2
    Cout = params["wt"].shape[1]
    Cm = params["w1"].shape[0]
    Ccat = C2 + Cout
    assert params["w1"].shape[1] == Ccat
    diffY, diffX = H2 - 2 * H1, W2 - 2 * W1
    assert diffY >= 0 and diffX >= 0, "negative F.pad (crop) is not supported"
    py0, px0 = diffY // 2, diffX // 2

    HW = H2 * W2
    Cin_p, C2_p, Cout_p, Cm_p = (_rup(c, 8) for c in (Cin, C2, Cout, Cm))
    Ccat_pp = C2_p + Cout_p
    HWp = _rup(HW, 128)

    # ---- activations -> (B, C_pad, HWp): channels on sublanes, flat H*W on lanes ----
    def flat_pad(x, c, c_pad):
        b = x.shape[0]
        x = x.reshape(b, c, -1).astype(f32)
        return jnp.pad(x, ((0, 0), (0, c_pad - c),
                           (0, HWp - x.shape[2]))).astype(compute_dtype)

    x2f = flat_pad(x2_nchw, C2, C2_p)

    # Nearest-upsampled, F.pad-placed copy of x1 (pure layout prep in the wrapper; the
    # parity weights are applied in-kernel, so no conv math and no scatter matrix here).
    u = jnp.repeat(jnp.repeat(x1_nchw.astype(f32), 2, axis=2), 2, axis=3)
    u = jnp.pad(u, ((0, 0), (0, 0),
                    (py0, H2 - py0 - 2 * H1), (px0, W2 - px0 - 2 * W1)))
    uf = flat_pad(u, Cin, Cin_p)

    # ---- ConvTranspose2d weight stacked over the 4 parities: (Cout_p, 4*Cin_p) ------
    wt = jnp.transpose(params["wt"].astype(f32), (2, 3, 1, 0)).reshape(4, Cout, Cin)
    wt = jnp.pad(wt, ((0, 0), (0, Cout_p - Cout), (0, Cin_p - Cin)))
    wt_stack = jnp.transpose(wt, (1, 0, 2)).reshape(Cout_p, 4 * Cin_p).astype(compute_dtype)

    # ---- parity masks (which output lane belongs to which 2x2 parity) + bias plane --
    pm = np.zeros((4, 1, HWp), np.float32)
    for Y in range(H2):
        for X in range(W2):
            y, x = Y - py0, X - px0
            if 0 <= y < 2 * H1 and 0 <= x < 2 * W1:
                pm[(y % 2) * 2 + (x % 2), 0, Y * W2 + X] = 1.0
    pmask = jnp.asarray(pm, dtype=compute_dtype)          # 0/1 values: exact in bf16
    valid = pm.sum(axis=0)[0]                             # 1.0 on non-F.pad positions
    bias_plane = (jnp.pad(params["bt"].astype(f32), (0, Cout_p - Cout))[:, None]
                  * jnp.asarray(valid, dtype=f32)[None, :])            # (Cout_p, HWp)

    # ---- 3x3 tap edge masks + lane-roll shifts (shared by both conv stages) ---------
    tm = np.zeros((9, 1, HWp), np.float32)
    for t, (dy, dx) in enumerate(_TAPS):
        for p in range(HW):
            y, x = p // W2, p % W2
            if 0 <= y + dy < H2 and 0 <= x + dx < W2:
                tm[t, 0, p] = 1.0
    tmask = jnp.asarray(tm, dtype=f32)                    # used on f32 rolled copies
    shifts = tuple((-(dy * W2 + dx)) % HWp for dy, dx in _TAPS)

    # ---- eval-mode BatchNorm: scale folded into conv weights, offset kept separate --
    def bn_fold(g, b, m, v):
        s = g.astype(f32) / jnp.sqrt(v.astype(f32) + eps)
        o = b.astype(f32) - m.astype(f32) * s
        return s, jnp.pad(o, (0, Cm_p - Cm))[:, None]     # scale (Cm,), offset (Cm_p,1)

    s1, o1 = bn_fold(params["bn1_gamma"], params["bn1_beta"],
                     params["bn1_mean"], params["bn1_var"])
    s2, o2 = bn_fold(params["bn2_gamma"], params["bn2_beta"],
                     params["bn2_mean"], params["bn2_var"])

    # ---- conv weights packed per tap over the [x2 | up] channel layout --------------
    w1t = jnp.transpose(params["w1"].astype(f32) * s1[:, None, None, None],
                        (2, 3, 0, 1)).reshape(9, Cm, Ccat)
    w1x2 = jnp.pad(w1t[:, :, :C2], ((0, 0), (0, Cm_p - Cm), (0, C2_p - C2)))
    w1up = jnp.pad(w1t[:, :, C2:], ((0, 0), (0, Cm_p - Cm), (0, Cout_p - Cout)))
    w1_packed = (jnp.concatenate([w1x2, w1up], axis=2)     # (9, Cm_p, Ccat_pp)
                 .transpose(1, 0, 2).reshape(Cm_p, 9 * Ccat_pp).astype(compute_dtype))

    w2t = jnp.transpose(params["w2"].astype(f32) * s2[:, None, None, None],
                        (2, 3, 0, 1)).reshape(9, Cm, Cm)
    w2_packed = (jnp.pad(w2t, ((0, 0), (0, Cm_p - Cm), (0, Cm_p - Cm)))
                 .transpose(1, 0, 2).reshape(Cm_p, 9 * Cm_p).astype(compute_dtype))

    # ------------------------------ fused kernel -------------------------------------
    def kernel(u_ref, x2_ref, pmask_ref, wtk_ref, bias_ref, tmask_ref,
               w1_ref, o1_ref, w2_ref, o2_ref, out_ref):
        u = u_ref[0]                                    # (Cin_p, HWp) compute_dtype
        x2 = x2_ref[0]                                  # (C2_p,  HWp) compute_dtype

        # ConvTranspose2d(k=2,s=2) + bias + F.pad: parity-masked copies of the
        # upsampled x1 stacked on sublanes -> one MXU dot with K = 4*Cin_p.
        v = jnp.concatenate([pmask_ref[k] * u for k in range(4)], axis=0)
        up = jnp.dot(wtk_ref[...], v, preferred_element_type=jnp.float32) + bias_ref[...]

        cat = jnp.concatenate([x2.astype(jnp.float32), up], axis=0)  # (Ccat_pp, HWp)

        def im2col(a_f32):
            # Shifted (rolled) + edge-masked copies stacked on the sublane axis.
            # Rolls run on the XLU (co-issues with the MXU); masks kill the wrap-around
            # so zero-padded conv edges and lane padding stay exact.
            cols = []
            for t in range(9):
                sh = a_f32 if shifts[t] == 0 else pltpu.roll(a_f32, shift=shifts[t], axis=1)
                cols.append(tmask_ref[t] * sh)
            return jnp.concatenate(cols, axis=0).astype(compute_dtype)

        # conv3x3(pad=1) over cat([x2, up]) -> BN1 (scale folded into w1) -> ReLU.
        acc1 = jnp.dot(w1_ref[...], im2col(cat), preferred_element_type=jnp.float32)
        h = jnp.maximum(acc1 + o1_ref[...], 0.0)

        # conv3x3(pad=1) -> BN2 (scale folded into w2) -> ReLU.
        acc2 = jnp.dot(w2_ref[...], im2col(h), preferred_element_type=jnp.float32)
        out_ref[0] = jnp.maximum(acc2 + o2_ref[...], 0.0).astype(out_ref.dtype)

    flops = 2 * B * HW * (Cout * 4 * Cin + Cm * 9 * Ccat + Cm * 9 * Cm)
    bytes_accessed = 4 * (uf.size + x2f.size + B * Cm_p * HWp + wt_stack.size
                          + bias_plane.size + w1_packed.size + w2_packed.size)

    out = pl.pallas_call(
        kernel,
        out_shape=jax.ShapeDtypeStruct((B, Cm_p, HWp), f32),
        grid_spec=pltpu.PrefetchScalarGridSpec(
            num_scalar_prefetch=0,
            grid=(B,),
            in_specs=[
                pl.BlockSpec((1, Cin_p, HWp), lambda b: (b, 0, 0)),
                pl.BlockSpec((1, C2_p, HWp), lambda b: (b, 0, 0)),
                pl.BlockSpec((4, 1, HWp), lambda b: (0, 0, 0)),
                pl.BlockSpec((Cout_p, 4 * Cin_p), lambda b: (0, 0)),
                pl.BlockSpec((Cout_p, HWp), lambda b: (0, 0)),
                pl.BlockSpec((9, 1, HWp), lambda b: (0, 0, 0)),
                pl.BlockSpec((Cm_p, 9 * Ccat_pp), lambda b: (0, 0)),
                pl.BlockSpec((Cm_p, 1), lambda b: (0, 0)),
                pl.BlockSpec((Cm_p, 9 * Cm_p), lambda b: (0, 0)),
                pl.BlockSpec((Cm_p, 1), lambda b: (0, 0)),
            ],
            out_specs=pl.BlockSpec((1, Cm_p, HWp), lambda b: (b, 0, 0)),
        ),
        compiler_params=pltpu.CompilerParams(dimension_semantics=("parallel",)),
        cost_estimate=pl.CostEstimate(flops=flops, transcendentals=0,
                                      bytes_accessed=bytes_accessed),
    )(uf, x2f, pmask, wt_stack, bias_plane, tmask, w1_packed, o1, w2_packed, o2)

    return out[:, :Cm, :HW].reshape(B, Cm, H2, W2)


# --------------------------------------------------------------------------------
# Pure-JAX reference (NCHW, same folded-BN eval semantics) for validation.
# --------------------------------------------------------------------------------
def up_forward_ref(x1_nchw, x2_nchw, p, eps=1e-5):
    f32 = jnp.float32
    x1 = x1_nchw.astype(f32)
    x2 = x2_nchw.astype(f32)
    B, Cin, H1, W1 = x1.shape
    Cout = p["wt"].shape[1]

    # ConvTranspose2d(kernel=2, stride=2)
    t = jnp.einsum('bcij,cokl->boikjl', x1, p["wt"].astype(f32))
    up = t.reshape(B, Cout, 2 * H1, 2 * W1) + p["bt"].astype(f32)[None, :, None, None]

    H2, W2 = x2.shape[2], x2.shape[3]
    diffY = H2 - up.shape[2]
    diffX = W2 - up.shape[3]
    up = jnp.pad(up, ((0, 0), (0, 0),
                      (diffY // 2, diffY - diffY // 2),
                      (diffX // 2, diffX - diffX // 2)))
    x = jnp.concatenate([x2, up], axis=1)

    def conv_bn_relu(x, w, gamma, beta, mean, var):
        y = lax.conv_general_dilated(x, w.astype(f32), (1, 1), ((1, 1), (1, 1)),
                                     dimension_numbers=('NCHW', 'OIHW', 'NCHW'))
        scale = gamma / jnp.sqrt(var + eps)
        shift = beta - mean * scale
        y = y * scale[None, :, None, None] + shift[None, :, None, None]
        return jnp.maximum(y, 0.0)

    x = conv_bn_relu(x, p["w1"], p["bn1_gamma"], p["bn1_beta"], p["bn1_mean"], p["bn1_var"])
    x = conv_bn_relu(x, p["w2"], p["bn2_gamma"], p["bn2_beta"], p["bn2_mean"], p["bn2_var"])
    return x


if __name__ == "__main__":
    in_channels, out_channels = 4, 2
    B, H1, W1 = 2, 8, 8
    H2, W2 = 16, 16
    C2 = in_channels - out_channels   # so cat([x2, up]) has `in_channels` channels
    Cm = out_channels
    Ccat = in_channels
    f32 = jnp.float32

    key = jax.random.PRNGKey(0)
    ks = jax.random.split(key, 14)
    p = {
        "wt": 0.2 * jax.random.normal(ks[0], (in_channels, out_channels, 2, 2), f32),
        "bt": 0.1 * jax.random.normal(ks[1], (out_channels,), f32),
        "w1": 0.2 * jax.random.normal(ks[2], (Cm, Ccat, 3, 3), f32),
        "bn1_gamma": 1.0 + 0.1 * jax.random.normal(ks[3], (Cm,), f32),
        "bn1_beta": 0.1 * jax.random.normal(ks[4], (Cm,), f32),
        "bn1_mean": 0.05 * jax.random.normal(ks[5], (Cm,), f32),
        "bn1_var": 0.5 + jax.nn.softplus(jax.random.normal(ks[6], (Cm,), f32)),
        "w2": 0.2 * jax.random.normal(ks[7], (Cm, Cm, 3, 3), f32),
        "bn2_gamma": 1.0 + 0.1 * jax.random.normal(ks[8], (Cm,), f32),
        "bn2_beta": 0.1 * jax.random.normal(ks[9], (Cm,), f32),
        "bn2_mean": 0.05 * jax.random.normal(ks[10], (Cm,), f32),
        "bn2_var": 0.5 + jax.nn.softplus(jax.random.normal(ks[11], (Cm,), f32)),
    }
    x1 = jax.random.normal(ks[12], (B, in_channels, H1, W1), f32)
    x2 = jax.random.normal(ks[13], (B, C2, H2, W2), f32)

    ref = jax.block_until_ready(up_forward_ref(x1, x2, p))

    # Exactness check with f32 MXU operands.
    out_f32 = jax.block_until_ready(up_forward(x1, x2, p, compute_dtype=jnp.float32))
    assert out_f32.shape == (B, out_channels, H2, W2), out_f32.shape
    err_f32 = float(jnp.max(jnp.abs(out_f32 - ref)))
    assert err_f32 < 2e-3, f"f32 path max abs err {err_f32}"

    # Fast path: bf16 MXU operands (f32 accumulation). Check error relative to the
    # output scale (ReLU zeros make pure relative error ill-defined).
    out_bf16 = jax.block_until_ready(up_forward(x1, x2, p))
    assert out_bf16.shape == (B, out_channels, H2, W2), out_bf16.shape
    scale = float(jnp.max(jnp.abs(ref))) + 1e-6
    err_bf16 = float(jnp.max(jnp.abs(out_bf16 - ref)))
    assert err_bf16 / scale < 5e-2, f"bf16 path scaled err {err_bf16 / scale}"

    print("KERNEL_OK")
</pallas_src>

<mosaic_0001>
module attributes {stable_mosaic.version = 11 : i64} {
  func.func @kernel(%arg0: i32, %arg1: memref<1x8x256xf32, #tpu.memory_space<vmem>>, %arg2: memref<1x8x256xf32, #tpu.memory_space<vmem>>, %arg3: memref<4x1x256xf32, #tpu.memory_space<vmem>>, %arg4: memref<8x32xf32, #tpu.memory_space<vmem>>, %arg5: memref<8x256xf32, #tpu.memory_space<vmem>>, %arg6: memref<9x1x256xf32, #tpu.memory_space<vmem>>, %arg7: memref<8x144xf32, #tpu.memory_space<vmem>>, %arg8: memref<8x1xf32, #tpu.memory_space<vmem>>, %arg9: memref<8x72xf32, #tpu.memory_space<vmem>>, %arg10: memref<8x1xf32, #tpu.memory_space<vmem>>, %arg11: memref<1x8x256xf32, #tpu.memory_space<vmem>>) attributes {dimension_semantics = [#tpu.dimension_semantics<parallel>], iteration_bounds = array<i64: 2>, scalar_prefetch = 0 : i64, scratch_operands = 0 : i64, tpu.core_type = #tpu.core_type<tc>, window_params = [{transform_indices = @transform_0, window_bounds = array<i64: 1, 8, 256>}, {transform_indices = @transform_1, window_bounds = array<i64: 1, 8, 256>}, {pipeline_mode = #tpu.pipeline_mode<synchronous>, transform_indices = @transform_2, window_bounds = array<i64: 4, 1, 256>}, {pipeline_mode = #tpu.pipeline_mode<synchronous>, transform_indices = @transform_3, window_bounds = array<i64: 8, 32>}, {pipeline_mode = #tpu.pipeline_mode<synchronous>, transform_indices = @transform_4, window_bounds = array<i64: 8, 256>}, {pipeline_mode = #tpu.pipeline_mode<synchronous>, transform_indices = @transform_5, window_bounds = array<i64: 9, 1, 256>}, {pipeline_mode = #tpu.pipeline_mode<synchronous>, transform_indices = @transform_6, window_bounds = array<i64: 8, 144>}, {pipeline_mode = #tpu.pipeline_mode<synchronous>, transform_indices = @transform_7, window_bounds = array<i64: 8, 1>}, {pipeline_mode = #tpu.pipeline_mode<synchronous>, transform_indices = @transform_8, window_bounds = array<i64: 8, 72>}, {pipeline_mode = #tpu.pipeline_mode<synchronous>, transform_indices = @transform_9, window_bounds = array<i64: 8, 1>}, {transform_indices = @transform_10, window_bounds = array<i64: 1, 8, 256>}]} {
    %c0 = arith.constant 0 : index
    %c0_0 = arith.constant 0 : index
    %c0_1 = arith.constant 0 : index
    %0 = vector.load %arg1[%c0, %c0_0, %c0_1] : memref<1x8x256xf32, #tpu.memory_space<vmem>>, vector<1x8x256xf32>
    %1 = vector.shape_cast %0 : vector<1x8x256xf32> to vector<8x256xf32>
    %c0_2 = arith.constant 0 : index
    %c0_3 = arith.constant 0 : index
    %c0_4 = arith.constant 0 : index
    %2 = vector.load %arg2[%c0_2, %c0_3, %c0_4] : memref<1x8x256xf32, #tpu.memory_space<vmem>>, vector<1x8x256xf32>
    %3 = vector.shape_cast %2 : vector<1x8x256xf32> to vector<8x256xf32>
    %c0_5 = arith.constant 0 : index
    %c0_6 = arith.constant 0 : index
    %c0_7 = arith.constant 0 : index
    %4 = vector.load %arg3[%c0_5, %c0_6, %c0_7] : memref<4x1x256xf32, #tpu.memory_space<vmem>>, vector<1x1x256xf32>
    %5 = vector.shape_cast %4 : vector<1x1x256xf32> to vector<1x256xf32>
    %6 = vector.broadcast %5 : vector<1x256xf32> to vector<8x256xf32>
    %7 = arith.mulf %6, %1 : vector<8x256xf32>
    %c1 = arith.constant 1 : index
    %c0_8 = arith.constant 0 : index
    %c0_9 = arith.constant 0 : index
    %8 = vector.load %arg3[%c1, %c0_8, %c0_9] : memref<4x1x256xf32, #tpu.memory_space<vmem>>, vector<1x1x256xf32>
    %9 = vector.shape_cast %8 : vector<1x1x256xf32> to vector<1x256xf32>
    %10 = vector.broadcast %9 : vector<1x256xf32> to vector<8x256xf32>
    %11 = arith.mulf %10, %1 : vector<8x256xf32>
    %c2 = arith.constant 2 : index
    %c0_10 = arith.constant 0 : index
    %c0_11 = arith.constant 0 : index
    %12 = vector.load %arg3[%c2, %c0_10, %c0_11] : memref<4x1x256xf32, #tpu.memory_space<vmem>>, vector<1x1x256xf32>
    %13 = vector.shape_cast %12 : vector<1x1x256xf32> to vector<1x256xf32>
    %14 = vector.broadcast %13 : vector<1x256xf32> to vector<8x256xf32>
    %15 = arith.mulf %14, %1 : vector<8x256xf32>
    %c3 = arith.constant 3 : index
    %c0_12 = arith.constant 0 : index
    %c0_13 = arith.constant 0 : index
    %16 = vector.load %arg3[%c3, %c0_12, %c0_13] : memref<4x1x256xf32, #tpu.memory_space<vmem>>, vector<1x1x256xf32>
    %17 = vector.shape_cast %16 : vector<1x1x256xf32> to vector<1x256xf32>
    %18 = vector.broadcast %17 : vector<1x256xf32> to vector<8x256xf32>
    %19 = arith.mulf %18, %1 : vector<8x256xf32>
    %20 = tpu.concatenate %7, %11, %15, %19 in 0 : vector<8x256xf32>, vector<8x256xf32>, vector<8x256xf32>, vector<8x256xf32> -> vector<32x256xf32>
    %c0_14 = arith.constant 0 : index
    %c0_15 = arith.constant 0 : index
    %21 = vector.load %arg4[%c0_14, %c0_15] : memref<8x32xf32, #tpu.memory_space<vmem>>, vector<8x32xf32>
    %cst = arith.constant dense<0.000000e+00> : vector<8x256xf32>
    %22 = tpu.matmul %21, %20, %cst {dimension_numbers = #tpu.dot_dimension_numbers<[1], [0], [0], [1], [0, 0, 1, 1], [], []>} : vector<8x32xf32>, vector<32x256xf32>, vector<8x256xf32> -> vector<8x256xf32>
    %c0_16 = arith.constant 0 : index
    %c0_17 = arith.constant 0 : index
    %23 = vector.load %arg5[%c0_16, %c0_17] : memref<8x256xf32, #tpu.memory_space<vmem>>, vector<8x256xf32>
    %24 = arith.addf %22, %23 : vector<8x256xf32>
    %25 = tpu.concatenate %3, %24 in 0 : vector<8x256xf32>, vector<8x256xf32> -> vector<16x256xf32>
    %c0_18 = arith.constant 0 : index
    %c0_19 = arith.constant 0 : index
    %26 = vector.load %arg7[%c0_18, %c0_19] : memref<8x144xf32, #tpu.memory_space<vmem>>, vector<8x144xf32>
    %c17_i32 = arith.constant 17 : i32
    %27 = tpu.dynamic_rotate %25 by %c17_i32 dim 1 : vector<16x256xf32>, i32 -> vector<16x256xf32>
    %c0_20 = arith.constant 0 : index
    %c0_21 = arith.constant 0 : index
    %c0_22 = arith.constant 0 : index
    %28 = vector.load %arg6[%c0_20, %c0_21, %c0_22] : memref<9x1x256xf32, #tpu.memory_space<vmem>>, vector<1x1x256xf32>
    %29 = vector.shape_cast %28 : vector<1x1x256xf32> to vector<1x256xf32>
    %30 = vector.broadcast %29 : vector<1x256xf32> to vector<16x256xf32>
    %31 = arith.mulf %30, %27 : vector<16x256xf32>
    %c16_i32 = arith.constant 16 : i32
    %32 = tpu.dynamic_rotate %25 by %c16_i32 dim 1 : vector<16x256xf32>, i32 -> vector<16x256xf32>
    %c1_23 = arith.constant 1 : index
    %c0_24 = arith.constant 0 : index
    %c0_25 = arith.constant 0 : index
    %33 = vector.load %arg6[%c1_23, %c0_24, %c0_25] : memref<9x1x256xf32, #tpu.memory_space<vmem>>, vector<1x1x256xf32>
    %34 = vector.shape_cast %33 : vector<1x1x256xf32> to vector<1x256xf32>
    %35 = vector.broadcast %34 : vector<1x256xf32> to vector<16x256xf32>
    %36 = arith.mulf %35, %32 : vector<16x256xf32>
    %c15_i32 = arith.constant 15 : i32
    %37 = tpu.dynamic_rotate %25 by %c15_i32 dim 1 : vector<16x256xf32>, i32 -> vector<16x256xf32>
    %c2_26 = arith.constant 2 : index
    %c0_27 = arith.constant 0 : index
    %c0_28 = arith.constant 0 : index
    %38 = vector.load %arg6[%c2_26, %c0_27, %c0_28] : memref<9x1x256xf32, #tpu.memory_space<vmem>>, vector<1x1x256xf32>
    %39 = vector.shape_cast %38 : vector<1x1x256xf32> to vector<1x256xf32>
    %40 = vector.broadcast %39 : vector<1x256xf32> to vector<16x256xf32>
    %41 = arith.mulf %40, %37 : vector<16x256xf32>
    %c1_i32 = arith.constant 1 : i32
    %42 = tpu.dynamic_rotate %25 by %c1_i32 dim 1 : vector<16x256xf32>, i32 -> vector<16x256xf32>
    %c3_29 = arith.constant 3 : index
    %c0_30 = arith.constant 0 : index
    %c0_31 = arith.constant 0 : index
    %43 = vector.load %arg6[%c3_29, %c0_30, %c0_31] : memref<9x1x256xf32, #tpu.memory_space<vmem>>, vector<1x1x256xf32>
    %44 = vector.shape_cast %43 : vector<1x1x256xf32> to vector<1x256xf32>
    %45 = vector.broadcast %44 : vector<1x256xf32> to vector<16x256xf32>
    %46 = arith.mulf %45, %42 : vector<16x256xf32>
    %c4 = arith.constant 4 : index
    %c0_32 = arith.constant 0 : index
    %c0_33 = arith.constant 0 : index
    %47 = vector.load %arg6[%c4, %c0_32, %c0_33] : memref<9x1x256xf32, #tpu.memory_space<vmem>>, vector<1x1x256xf32>
    %48 = vector.shape_cast %47 : vector<1x1x256xf32> to vector<1x256xf32>
    %49 = vector.broadcast %48 : vector<1x256xf32> to vector<16x256xf32>
    %50 = arith.mulf %49, %25 : vector<16x256xf32>
    %c255_i32 = arith.constant 255 : i32
    %51 = tpu.dynamic_rotate %25 by %c255_i32 dim 1 : vector<16x256xf32>, i32 -> vector<16x256xf32>
    %c5 = arith.constant 5 : index
    %c0_34 = arith.constant 0 : index
    %c0_35 = arith.constant 0 : index
    %52 = vector.load %arg6[%c5, %c0_34, %c0_35] : memref<9x1x256xf32, #tpu.memory_space<vmem>>, vector<1x1x256xf32>
    %53 = vector.shape_cast %52 : vector<1x1x256xf32> to vector<1x256xf32>
    %54 = vector.broadcast %53 : vector<1x256xf32> to vector<16x256xf32>
    %55 = arith.mulf %54, %51 : vector<16x256xf32>
    %c241_i32 = arith.constant 241 : i32
    %56 = tpu.dynamic_rotate %25 by %c241_i32 dim 1 : vector<16x256xf32>, i32 -> vector<16x256xf32>
    %c6 = arith.constant 6 : index
    %c0_36 = arith.constant 0 : index
    %c0_37 = arith.constant 0 : index
    %57 = vector.load %arg6[%c6, %c0_36, %c0_37] : memref<9x1x256xf32, #tpu.memory_space<vmem>>, vector<1x1x256xf32>
    %58 = vector.shape_cast %57 : vector<1x1x256xf32> to vector<1x256xf32>
    %59 = vector.broadcast %58 : vector<1x256xf32> to vector<16x256xf32>
    %60 = arith.mulf %59, %56 : vector<16x256xf32>
    %c240_i32 = arith.constant 240 : i32
    %61 = tpu.dynamic_rotate %25 by %c240_i32 dim 1 : vector<16x256xf32>, i32 -> vector<16x256xf32>
    %c7 = arith.constant 7 : index
    %c0_38 = arith.constant 0 : index
    %c0_39 = arith.constant 0 : index
    %62 = vector.load %arg6[%c7, %c0_38, %c0_39] : memref<9x1x256xf32, #tpu.memory_space<vmem>>, vector<1x1x256xf32>
    %63 = vector.shape_cast %62 : vector<1x1x256xf32> to vector<1x256xf32>
    %64 = vector.broadcast %63 : vector<1x256xf32> to vector<16x256xf32>
    %65 = arith.mulf %64, %61 : vector<16x256xf32>
    %c239_i32 = arith.constant 239 : i32
    %66 = tpu.dynamic_rotate %25 by %c239_i32 dim 1 : vector<16x256xf32>, i32 -> vector<16x256xf32>
    %c8 = arith.constant 8 : index
    %c0_40 = arith.constant 0 : index
    %c0_41 = arith.constant 0 : index
    %67 = vector.load %arg6[%c8, %c0_40, %c0_41] : memref<9x1x256xf32, #tpu.memory_space<vmem>>, vector<1x1x256xf32>
    %68 = vector.shape_cast %67 : vector<1x1x256xf32> to vector<1x256xf32>
    %69 = vector.broadcast %68 : vector<1x256xf32> to vector<16x256xf32>
    %70 = arith.mulf %69, %66 : vector<16x256xf32>
    %71 = tpu.concatenate %31, %36, %41, %46, %50, %55, %60, %65, %70 in 0 : vector<16x256xf32>, vector<16x256xf32>, vector<16x256xf32>, vector<16x256xf32>, vector<16x256xf32>, vector<16x256xf32>, vector<16x256xf32>, vector<16x256xf32>, vector<16x256xf32> -> vector<144x256xf32>
    %cst_42 = arith.constant dense<0.000000e+00> : vector<8x256xf32>
    %72 = tpu.matmul %26, %71, %cst_42 {dimension_numbers = #tpu.dot_dimension_numbers<[1], [0], [0], [1], [0, 0, 1, 1], [], []>} : vector<8x144xf32>, vector<144x256xf32>, vector<8x256xf32> -> vector<8x256xf32>
    %c0_43 = arith.constant 0 : index
    %c0_44 = arith.constant 0 : index
    %73 = vector.load %arg8[%c0_43, %c0_44] : memref<8x1xf32, #tpu.memory_space<vmem>>, vector<8x1xf32>
    %74 = vector.broadcast %73 : vector<8x1xf32> to vector<8x256xf32>
    %75 = arith.addf %72, %74 : vector<8x256xf32>
    %cst_45 = arith.constant 0.000000e+00 : f32
    %76 = vector.broadcast %cst_45 : f32 to vector<8x256xf32>
    %77 = arith.maximumf %75, %76 : vector<8x256xf32>
    %c0_46 = arith.constant 0 : index
    %c0_47 = arith.constant 0 : index
    %78 = vector.load %arg9[%c0_46, %c0_47] : memref<8x72xf32, #tpu.memory_space<vmem>>, vector<8x72xf32>
    %c17_i32_48 = arith.constant 17 : i32
    %79 = tpu.dynamic_rotate %77 by %c17_i32_48 dim 1 : vector<8x256xf32>, i32 -> vector<8x256xf32>
    %c0_49 = arith.constant 0 : index
    %c0_50 = arith.constant 0 : index
    %c0_51 = arith.constant 0 : index
    %80 = vector.load %arg6[%c0_49, %c0_50, %c0_51] : memref<9x1x256xf32, #tpu.memory_space<vmem>>, vector<1x1x256xf32>
    %81 = vector.shape_cast %80 : vector<1x1x256xf32> to vector<1x256xf32>
    %82 = vector.broadcast %81 : vector<1x256xf32> to vector<8x256xf32>
    %83 = arith.mulf %82, %79 : vector<8x256xf32>
    %c16_i32_52 = arith.constant 16 : i32
    %84 = tpu.dynamic_rotate %77 by %c16_i32_52 dim 1 : vector<8x256xf32>, i32 -> vector<8x256xf32>
    %c1_53 = arith.constant 1 : index
    %c0_54 = arith.constant 0 : index
    %c0_55 = arith.constant 0 : index
    %85 = vector.load %arg6[%c1_53, %c0_54, %c0_55] : memref<9x1x256xf32, #tpu.memory_space<vmem>>, vector<1x1x256xf32>
    %86 = vector.shape_cast %85 : vector<1x1x256xf32> to vector<1x256xf32>
    %87 = vector.broadcast %86 : vector<1x256xf32> to vector<8x256xf32>
    %88 = arith.mulf %87, %84 : vector<8x256xf32>
    %c15_i32_56 = arith.constant 15 : i32
    %89 = tpu.dynamic_rotate %77 by %c15_i32_56 dim 1 : vector<8x256xf32>, i32 -> vector<8x256xf32>
    %c2_57 = arith.constant 2 : index
    %c0_58 = arith.constant 0 : index
    %c0_59 = arith.constant 0 : index
    %90 = vector.load %arg6[%c2_57, %c0_58, %c0_59] : memref<9x1x256xf32, #tpu.memory_space<vmem>>, vector<1x1x256xf32>
    %91 = vector.shape_cast %90 : vector<1x1x256xf32> to vector<1x256xf32>
    %92 = vector.broadcast %91 : vector<1x256xf32> to vector<8x256xf32>
    %93 = arith.mulf %92, %89 : vector<8x256xf32>
    %c1_i32_60 = arith.constant 1 : i32
    %94 = tpu.dynamic_rotate %77 by %c1_i32_60 dim 1 : vector<8x256xf32>, i32 -> vector<8x256xf32>
    %c3_61 = arith.constant 3 : index
    %c0_62 = arith.constant 0 : index
    %c0_63 = arith.constant 0 : index
    %95 = vector.load %arg6[%c3_61, %c0_62, %c0_63] : memref<9x1x256xf32, #tpu.memory_space<vmem>>, vector<1x1x256xf32>
    %96 = vector.shape_cast %95 : vector<1x1x256xf32> to vector<1x256xf32>
    %97 = vector.broadcast %96 : vector<1x256xf32> to vector<8x256xf32>
    %98 = arith.mulf %97, %94 : vector<8x256xf32>
    %c4_64 = arith.constant 4 : index
    %c0_65 = arith.constant 0 : index
    %c0_66 = arith.constant 0 : index
    %99 = vector.load %arg6[%c4_64, %c0_65, %c0_66] : memref<9x1x256xf32, #tpu.memory_space<vmem>>, vector<1x1x256xf32>
    %100 = vector.shape_cast %99 : vector<1x1x256xf32> to vector<1x256xf32>
    %101 = vector.broadcast %100 : vector<1x256xf32> to vector<8x256xf32>
    %102 = arith.mulf %101, %77 : vector<8x256xf32>
    %c255_i32_67 = arith.constant 255 : i32
    %103 = tpu.dynamic_rotate %77 by %c255_i32_67 dim 1 : vector<8x256xf32>, i32 -> vector<8x256xf32>
    %c5_68 = arith.constant 5 : index
    %c0_69 = arith.constant 0 : index
    %c0_70 = arith.constant 0 : index
    %104 = vector.load %arg6[%c5_68, %c0_69, %c0_70] : memref<9x1x256xf32, #tpu.memory_space<vmem>>, vector<1x1x256xf32>
    %105 = vector.shape_cast %104 : vector<1x1x256xf32> to vector<1x256xf32>
    %106 = vector.broadcast %105 : vector<1x256xf32> to vector<8x256xf32>
    %107 = arith.mulf %106, %103 : vector<8x256xf32>
    %c241_i32_71 = arith.constant 241 : i32
    %108 = tpu.dynamic_rotate %77 by %c241_i32_71 dim 1 : vector<8x256xf32>, i32 -> vector<8x256xf32>
    %c6_72 = arith.constant 6 : index
    %c0_73 = arith.constant 0 : index
    %c0_74 = arith.constant 0 : index
    %109 = vector.load %arg6[%c6_72, %c0_73, %c0_74] : memref<9x1x256xf32, #tpu.memory_space<vmem>>, vector<1x1x256xf32>
    %110 = vector.shape_cast %109 : vector<1x1x256xf32> to vector<1x256xf32>
    %111 = vector.broadcast %110 : vector<1x256xf32> to vector<8x256xf32>
    %112 = arith.mulf %111, %108 : vector<8x256xf32>
    %c240_i32_75 = arith.constant 240 : i32
    %113 = tpu.dynamic_rotate %77 by %c240_i32_75 dim 1 : vector<8x256xf32>, i32 -> vector<8x256xf32>
    %c7_76 = arith.constant 7 : index
    %c0_77 = arith.constant 0 : index
    %c0_78 = arith.constant 0 : index
    %114 = vector.load %arg6[%c7_76, %c0_77, %c0_78] : memref<9x1x256xf32, #tpu.memory_space<vmem>>, vector<1x1x256xf32>
    %115 = vector.shape_cast %114 : vector<1x1x256xf32> to vector<1x256xf32>
    %116 = vector.broadcast %115 : vector<1x256xf32> to vector<8x256xf32>
    %117 = arith.mulf %116, %113 : vector<8x256xf32>
    %c239_i32_79 = arith.constant 239 : i32
    %118 = tpu.dynamic_rotate %77 by %c239_i32_79 dim 1 : vector<8x256xf32>, i32 -> vector<8x256xf32>
    %c8_80 = arith.constant 8 : index
    %c0_81 = arith.constant 0 : index
    %c0_82 = arith.constant 0 : index
    %119 = vector.load %arg6[%c8_80, %c0_81, %c0_82] : memref<9x1x256xf32, #tpu.memory_space<vmem>>, vector<1x1x256xf32>
    %120 = vector.shape_cast %119 : vector<1x1x256xf32> to vector<1x256xf32>
    %121 = vector.broadcast %120 : vector<1x256xf32> to vector<8x256xf32>
    %122 = arith.mulf %121, %118 : vector<8x256xf32>
    %123 = tpu.concatenate %83, %88, %93, %98, %102, %107, %112, %117, %122 in 0 : vector<8x256xf32>, vector<8x256xf32>, vector<8x256xf32>, vector<8x256xf32>, vector<8x256xf32>, vector<8x256xf32>, vector<8x256xf32>, vector<8x256xf32>, vector<8x256xf32> -> vector<72x256xf32>
    %cst_83 = arith.constant dense<0.000000e+00> : vector<8x256xf32>
    %124 = tpu.matmul %78, %123, %cst_83 {dimension_numbers = #tpu.dot_dimension_numbers<[1], [0], [0], [1], [0, 0, 1, 1], [], []>} : vector<8x72xf32>, vector<72x256xf32>, vector<8x256xf32> -> vector<8x256xf32>
    %c0_84 = arith.constant 0 : index
    %c0_85 = arith.constant 0 : index
    %125 = vector.load %arg10[%c0_84, %c0_85] : memref<8x1xf32, #tpu.memory_space<vmem>>, vector<8x1xf32>
    %126 = vector.broadcast %125 : vector<8x1xf32> to vector<8x256xf32>
    %127 = arith.addf %124, %126 : vector<8x256xf32>
    %cst_86 = arith.constant 0.000000e+00 : f32
    %128 = vector.broadcast %cst_86 : f32 to vector<8x256xf32>
    %129 = arith.maximumf %127, %128 : vector<8x256xf32>
    %c0_87 = arith.constant 0 : index
    %c0_88 = arith.constant 0 : index
    %c0_89 = arith.constant 0 : index
    %130 = vector.load %arg11[%c0_87, %c0_88, %c0_89] : memref<1x8x256xf32, #tpu.memory_space<vmem>>, vector<1x8x256xf32>
    %131 = vector.shape_cast %130 : vector<1x8x256xf32> to vector<8x256xf32>
    %132 = vector.shape_cast %129 : vector<8x256xf32> to vector<1x8x256xf32>
    tpu.vector_store %arg11[%c0_87, %c0_88, %c0_89], %132 {strides = array<i32>} : memref<1x8x256xf32, #tpu.memory_space<vmem>>, vector<1x8x256xf32>,
    return
  }
  func.func @transform_0(%arg0: i32) -> (i32, i32, i32) {
    %c0_i32 = arith.constant 0 : i32
    %c0_i32_0 = arith.constant 0 : i32
    %c0_i32_1 = arith.constant 0 : i32
    return %arg0, %c0_i32, %c0_i32_0 : i32, i32, i32
  }
  func.func @transform_1(%arg0: i32) -> (i32, i32, i32) {
    %c0_i32 = arith.constant 0 : i32
    %c0_i32_0 = arith.constant 0 : i32
    %c0_i32_1 = arith.constant 0 : i32
    return %arg0, %c0_i32, %c0_i32_0 : i32, i32, i32
  }
  func.func @transform_2(%arg0: i32) -> (i32, i32, i32) {
    %c0_i32 = arith.constant 0 : i32
    %c0_i32_0 = arith.constant 0 : i32
    %c0_i32_1 = arith.constant 0 : i32
    %c0_i32_2 = arith.constant 0 : i32
    return %c0_i32, %c0_i32_0, %c0_i32_1 : i32, i32, i32
  }
  func.func @transform_3(%arg0: i32) -> (i32, i32) {
    %c0_i32 = arith.constant 0 : i32
    %c0_i32_0 = arith.constant 0 : i32
    %c0_i32_1 = arith.constant 0 : i32
    return %c0_i32, %c0_i32_0 : i32, i32
  }
  func.func @transform_4(%arg0: i32) -> (i32, i32) {
    %c0_i32 = arith.constant 0 : i32
    %c0_i32_0 = arith.constant 0 : i32
    %c0_i32_1 = arith.constant 0 : i32
    return %c0_i32, %c0_i32_0 : i32, i32
  }
  func.func @transform_5(%arg0: i32) -> (i32, i32, i32) {
    %c0_i32 = arith.constant 0 : i32
    %c0_i32_0 = arith.constant 0 : i32
    %c0_i32_1 = arith.constant 0 : i32
    %c0_i32_2 = arith.constant 0 : i32
    return %c0_i32, %c0_i32_0, %c0_i32_1 : i32, i32, i32
  }
  func.func @transform_6(%arg0: i32) -> (i32, i32) {
    %c0_i32 = arith.constant 0 : i32
    %c0_i32_0 = arith.constant 0 : i32
    %c0_i32_1 = arith.constant 0 : i32
    return %c0_i32, %c0_i32_0 : i32, i32
  }
  func.func @transform_7(%arg0: i32) -> (i32, i32) {
    %c0_i32 = arith.constant 0 : i32
    %c0_i32_0 = arith.constant 0 : i32
    %c0_i32_1 = arith.constant 0 : i32
    return %c0_i32, %c0_i32_0 : i32, i32
  }
  func.func @transform_8(%arg0: i32) -> (i32, i32) {
    %c0_i32 = arith.constant 0 : i32
    %c0_i32_0 = arith.constant 0 : i32
    %c0_i32_1 = arith.constant 0 : i32
    return %c0_i32, %c0_i32_0 : i32, i32
  }
  func.func @transform_9(%arg0: i32) -> (i32, i32) {
    %c0_i32 = arith.constant 0 : i32
    %c0_i32_0 = arith.constant 0 : i32
    %c0_i32_1 = arith.constant 0 : i32
    return %c0_i32, %c0_i32_0 : i32, i32
  }
  func.func @transform_10(%arg0: i32) -> (i32, i32, i32) {
    %c0_i32 = arith.constant 0 : i32
    %c0_i32_0 = arith.constant 0 : i32
    %c0_i32_1 = arith.constant 0 : i32
    return %arg0, %c0_i32, %c0_i32_0 : i32, i32, i32
  }
}

</mosaic_0001>

<bundles_post_ra>
// kernel: tpu_custom_call.1
= control target key start
LH: loop header
LB: loop body
LE: loop exit
PB: predicated region body
PF: predicated region fallthrough
CT: control target
= control target key end

     0   :  { %s2422_s0 = inlined_call_operand.hbm [shape: f32[2,8,256], index: 0, kind: input, shape index: {}]   ;;  %s2423_s1 = inlined_call_operand.hbm [shape: f32[2,8,256], index: 1, kind: input, shape index: {}]   ;;  %s2424_s2 = inlined_call_operand.hbm [shape: f32[4,1,256], index: 2, kind: input, shape index: {}]   ;;  %s2425_s3 = inlined_call_operand.hbm [shape: f32[8,32], index: 3, kind: input, shape index: {}]   ;;  %s2426_s4 = inlined_call_operand.vmem [shape: f32[8,256], index: 4, kind: input, shape index: {}]   ;;  %s2427_s5 = inlined_call_operand.vmem [shape: f32[9,1,256], index: 5, kind: input, shape index: {}]   ;;  %s2428_s6 = inlined_call_operand.hbm [shape: f32[8,144], index: 6, kind: input, shape index: {}]   ;;  %s2429_s7 = inlined_call_operand.vmem [shape: f32[8,1], index: 7, kind: input, shape index: {}]   ;;  %s2430_s8 = inlined_call_operand.vmem [shape: f32[8,72], index: 8, kind: input, shape index: {}]   ;;  %s2431_s9 = inlined_call_operand.vmem [shape: f32[8,1], index: 9, kind: input, shape index: {}]   ;;  %s2432_s10 = inlined_call_operand.hbm [shape: f32[2,8,256], index: 10, kind: output, shape index: {}]  }
   0x1   :  { %2440 = sst [smem:[#allocation19_spill]] %s2424_s2 }
   0x2   :  { %2441 = sst [smem:[#allocation20_spill]] %s2425_s3 }
   0x3   :  { %2442 = sst [smem:[#allocation21_spill]] %s2428_s6 }
   0x4   :  { %2443 = sst [smem:[#allocation22_spill]] %s2430_s8 }
   0x5   :  { %2444 = sst [smem:[#allocation23_spill]] %s2432_s10 }
   0x6   :  { %15 = vsyncpa [#allocation3], 0 }
   0x7   :  { %17 = vsyncpa [#allocation3 + $0x1], 0 }
   0x8   :  { %18 = vsyncpa [#allocation6], 0 }
   0x9   :  { %20 = vsyncpa [#allocation6 + $0x1], 0 }
   0xa   :  { %21 = vsyncpa [#allocation9], 0 }
   0xb   :  { %22 = vsyncpa [#allocation4], 0 }
   0xc   :  { %24 = vsyncpa [#allocation4 + $0x1], 0  ;;  %s1715_s13 = smov 0   ;;  %s1717_s14 = smov 0  }
   0xd   :  { %s1719_s15 = smov 0   ;;  %s1721_s16 = smov 0  }
   0xe LB: > { %2445 = sst [smem:[#allocation17_spill]] %s1628_s13  ;;  %s1736_s17 = sadd.s32 4294967295, %s1640_s16   ;;  %s1640_s16 = sphi %s1721_s16, %s2474_s16   ;;  %s1636_s15 = sphi %s1719_s15, %s2473_s15   ;;  %s1632_s14 = sphi %s1717_s14, %s2472_s14   ;;  %s1628_s13 = sphi %s1715_s13, %s2471_s13  }
   0xf   : > { %s1225_s18 = sadd.s32 4294967294, %s1640_s16   ;;  %p50_p0 = scmp.ne.s32.totalorder %s1632_s14, %s1628_s13 }
  0x10   : > { %p2433_p1 = scmp.eq.s32.totalorder %s1736_s17, 0  ;;  %p274_p3 = scmp.eq.s32.totalorder %s1225_s18, 1 }
  0x11   : > { %p1226_p5 = scmp.ge.s32.totalorder %s1640_s16, 1  ;;  %p281_p7 = scmp.lt.s32.totalorder %s1640_s16, 3 }
  0x12   : > { %p1745_p4 = por %p2433_p1, %p50_p0  ;;  %p1750_p6 = por %p274_p3, %p50_p0 }
  0x13   : > { %p1755_p8 = pnand %p1226_p5, %p281_p7  ;;  %s1642_s22 = smov [#allocation7]  }
  0x14   : > { %s2446_s19 = scalar_select %p1745_p4, 1, 0 }
  0x15   : > { %s2447_s20 = scalar_select %p1750_p6, 1, 0 }
  0x16   : > { %s2449_s21 = scalar_select %p1755_p8, 1, 0 }
  0x17   : > { %2448 = sst [smem:[#allocation18_spill]] %s2447_s20  ;;  %s293_s23 = sshll.u32 %s1642_s22, 4  ;;  %s1759_s23 = int_to_ptr.vmem [resolvable:$true] %s293_s23 }
  0x18   : > { %p1341_p9 = pneg %p1755_p8  ;;  %s1643_s25 = smov [#allocation8]  }
  0x19   : > { %s307_s26 = sshll.u32 %s1643_s25, 4  ;;  %s1644_s27 = smov [#allocation10]   ;;  %s1770_s26 = int_to_ptr.vmem [resolvable:$true] %s307_s26 }
  0x1a   : > { %p1766_p11 = pnand %p1341_p9, %p2433_p1  ;;  %s1772_s28 = sshll.u32 %s1644_s27, 4  ;;  %s325_s28 = int_to_ptr.vmem [resolvable:$true] %s1772_s28 }
  0x1b   : > { %s2451_s2 = sld [smem:[#allocation19_spill]] }
  0x1c   : > { %p1782_p13 = pneg %p1766_p11 }
  0x21   : > { %s1418_s11 = scalar_lea.hbm %s2451_s2, 128 }
  0x22   : > { %p1419_p12 = scmp.ne.s32.totalorder %s2451_s2, %s1418_s11  ;;  %p1425_p5 = scmp.lt.u32.totalorder %s1418_s11, %s2451_s2 }
  0x24   : > { %p1421_p0 = pnand %p1782_p13, %p1419_p12 }
  0x26   : > { %p1422_p3 = pneg %p1421_p0 }
  0x28   : > { %p1427_p7 = pnand %p1425_p5, %p1422_p3 }
  0x2a   : > { %1430 = shalt.err (!%p1427_p7)
}
  0x2b   : > { %s1431_s29 = scalar_lea.vmem %s1759_s23, 128  ;;  %p1439_p2 = scmp.lt.s32.totalorder %s1759_s23, %s1759_s23 }
  0x2c   : > { %p1432_p9 = scmp.ne.s32.totalorder %s1759_s23, %s1431_s29  ;;  %p1440_p6 = scmp.lt.s32.totalorder %s1431_s29, %s1431_s29 }
  0x2e   : > { %p1434_p10 = pnand %p1432_p9, %p1782_p13  ;;  %p1441_p12 = por %p1440_p6, %p1439_p2 }
  0x30   : > { %p1435_p1 = pneg %p1434_p10 }
  0x32   : > { %p1442_p0 = pnand %p1441_p12, %p1435_p1 }
  0x34   : > { %1445 = shalt.err (!%p1442_p0)
}
  0x35   : > { %s1645_s30 = smov 32   ;;  %s1646_s11 = smov 2  }
  0x36   : > { %1344 = dma.hbm_to_vmem [thread:$0]  (!%p1766_p11), %s2451_s2, 128, %s1759_s23, [#allocation6], %s1645_s30, %s1645_s30, %s1646_s11  }
  0x37   : > { %s2453_s3 = sld [smem:[#allocation20_spill]] }
  0x3d   : > { %s1446_s20 = scalar_lea.hbm %s2453_s3, 128 }
  0x3e   : > { %p1447_p2 = scmp.ne.s32.totalorder %s2453_s3, %s1446_s20  ;;  %p1453_p10 = scmp.lt.u32.totalorder %s1446_s20, %s2453_s3 }
  0x40   : > { %p1449_p1 = pnand %p1447_p2, %p1782_p13 }
  0x42   : > { %p1450_p6 = pneg %p1449_p1 }
  0x44   : > { %p1455_p3 = pnand %p1453_p10, %p1450_p6 }
  0x46   : > { %1458 = shalt.err (!%p1455_p3)
}
  0x47   : > { %s1459_s23 = scalar_lea.vmem %s1770_s26, 128  ;;  %p1467_p12 = scmp.lt.s32.totalorder %s1770_s26, %s1770_s26 }
  0x48   : > { %p1460_p5 = scmp.ne.s32.totalorder %s1770_s26, %s1459_s23  ;;  %p1468_p0 = scmp.lt.s32.totalorder %s1459_s23, %s1459_s23 }
  0x4a   : > { %p1462_p7 = pnand %p1460_p5, %p1782_p13  ;;  %p1469_p2 = por %p1468_p0, %p1467_p12 }
  0x4c   : > { %p1463_p9 = pneg %p1462_p7 }
  0x4e   : > { %p1470_p1 = pnand %p1469_p2, %p1463_p9 }
  0x50   : > { %1473 = shalt.err (!%p1470_p1)
}
  0x51   : > { %1347 = dma.hbm_to_vmem [thread:$0]  (!%p1766_p11), %s2453_s3, 128, %s1770_s26, [#allocation9]  }
  0x52   : > { %s2454_s6 = sld [smem:[#allocation21_spill]] }
  0x58   : > { %s1474_s30 = scalar_lea.hbm %s2454_s6, 256 }
  0x59   : > { %p1475_p6 = scmp.ne.s32.totalorder %s2454_s6, %s1474_s30  ;;  %p1481_p5 = scmp.lt.u32.totalorder %s1474_s30, %s2454_s6 }
  0x5b   : > { %p1477_p10 = pnand %p1475_p6, %p1782_p13 }
  0x5d   : > { %p1478_p3 = pneg %p1477_p10 }
  0x5f   : > { %p1483_p7 = pnand %p1481_p5, %p1478_p3 }
  0x61   : > { %1486 = shalt.err (!%p1483_p7)
}
  0x62   : > { %s1487_s27 = scalar_lea.vmem %s325_s28, 256  ;;  %p1495_p2 = scmp.lt.s32.totalorder %s325_s28, %s325_s28 }
  0x63   : > { %p1488_p9 = scmp.ne.s32.totalorder %s325_s28, %s1487_s27  ;;  %p1496_p1 = scmp.lt.s32.totalorder %s1487_s27, %s1487_s27 }
  0x65   : > { %p1490_p12 = pnand %p1488_p9, %p1782_p13  ;;  %p1497_p4 = por %p1496_p1, %p1495_p2 }
  0x67   : > { %p1491_p0 = pneg %p1490_p12 }
  0x69   : > { %p1498_p8 = pnand %p1497_p4, %p1491_p0 }
  0x6b   : > { %1501 = shalt.err (!%p1498_p8)
}
  0x6c   : > { %1350 = dma.hbm_to_vmem [thread:$0]  (!%p1766_p11), %s2454_s6, 256, %s325_s28, [#allocation9]  }
  0x6d   : > { %s1846_s22 = sadd.s32 1, %s1640_s16   ;;  %s37_s24 = sadd.s32 1, %s1636_s15 }
  0x6e   : > { %s34_s23 = ssub.s32 %s1640_s16, %s1846_s22  ;;  %p44_p8 = scmp.ne.s32.totalorder %s1636_s15, %s1632_s14 }
  0x6f   : > { %p35_p4 = scmp.eq.s32.totalorder %s34_s23, 0  ;;  %p45_p13 = scmp.eq.s32.totalorder %s1640_s16, 0 }
  0x70   : > { %p1365_p6 = scmp.lt.s32.totalorder %s1640_s16, 2  ;;  %p2455_p3 = scmp.eq.s32.totalorder %s1736_s17, 1 }
  0x71   : > { %s1856_s8 = scalar_select %p35_p4, %s1636_s15, %s37_s24  }
  0x72   : > { %p46_p10 = por %p45_p13, %p44_p8  ;;  %p1860_p5 = por %p2455_p3, %p44_p8 }
  0x73   : > { %s344_s13 = sand.u32 1, %s1636_s15   ;;  %s1260_s20 = sshll.u32 %s1640_s16, 8 }
  0x74   : > { %s2456_s10 = scalar_select %p1860_p5, 1, 0 }
  0x75   : > { %s1866_s28 = sshll.u32 %s344_s13, 4  ;;  %s1871_s12 = scalar_lea.hbm %s2422_s0, %s1260_s20 }
  0x76   : > { %s348_s18 = scalar_lea.vmem [#allocation2], %s1866_s28  ;;  %p1874_p11 = pnand %p1365_p6, %p46_p10 }
  0x77   : > { %s356_s25 = sshll.u32 %s348_s18, 4  ;;  %s1883_s23 = scalar_lea.hbm %s2423_s1, %s1260_s20  ;;  %s1878_s25 = int_to_ptr.vmem [resolvable:$true] %s356_s25 }
  0x78   : > { %s345_s24 = scalar_lea.sflag [#allocation3], %s344_s13  ;;  %s1502_s30 = scalar_lea.hbm %s1871_s12, 256 }
  0x79   : > { %p1503_p7 = scmp.ne.s32.totalorder %s1871_s12, %s1502_s30  ;;  %p1504_p9 = pneg %p1874_p11 }
  0x7a   : > { %s1507_s2 = scalar_lea.hbm %s2422_s0, 512  ;;  %p1508_p2 = scmp.lt.u32.totalorder %s1871_s12, %s2422_s0 }
  0x7b   : > { %p1505_p12 = pnand %p1504_p9, %p1503_p7  ;;  %p1509_p1 = scmp.lt.u32.totalorder %s1507_s2, %s1502_s30 }
  0x7c   : > { %p1511_p8 = scmp.lt.u32.totalorder %s1502_s30, %s1871_s12 }
  0x7d   : > { %p1506_p0 = pneg %p1505_p12  ;;  %p1510_p4 = por %p1509_p1, %p1508_p2 }
  0x7f   : > { %p1512_p13 = por %p1511_p8, %p1510_p4 }
  0x81   : > { %p1513_p6 = pnand %p1512_p13, %p1506_p0 }
  0x83   : > { %1516 = shalt.err (!%p1513_p6)
}
  0x84   : > { %s1517_s13 = scalar_lea.vmem %s1878_s25, 256  ;;  %s1647_s20 = smov [#allocation2]  }
  0x85   : > { %p1518_p10 = scmp.ne.s32.totalorder %s1878_s25, %s1517_s13  ;;  %s1522_s26 = sshll.u32 %s1647_s20, 4  ;;  %s1523_s26 = int_to_ptr.vmem [resolvable:$false] %s1522_s26 }
  0x86   : > { %s1524_s3 = scalar_lea.vmem %s1523_s26, 512  ;;  %p1525_p12 = scmp.lt.s32.totalorder %s1878_s25, %s1523_s26 }
  0x87   : > { %p1520_p3 = pnand %p1518_p10, %p1504_p9  ;;  %p1526_p2 = scmp.lt.s32.totalorder %s1524_s3, %s1517_s13 }
  0x89   : > { %p1521_p7 = pneg %p1520_p3  ;;  %p1527_p1 = por %p1526_p2, %p1525_p12 }
  0x8b   : > { %p1528_p4 = pnand %p1527_p1, %p1521_p7 }
  0x8d   : > { %1531 = shalt.err (!%p1528_p4)
}
  0x8e   : > { %1354 = dma.hbm_to_vmem [thread:$0]  (!%p1874_p11), %s1871_s12, 256, %s1878_s25, %s345_s24  }
  0x8f   : > { %s363_s2 = sand.u32 1, %s1640_s16   ;;  %s367_s6 = scalar_lea.vmem [#allocation5], %s1866_s28 }
  0x90   : > { %s375_s29 = sshll.u32 %s367_s6, 4  ;;  %s364_s30 = scalar_lea.sflag [#allocation6], %s363_s2  ;;  %s376_s29 = int_to_ptr.vmem [resolvable:$true] %s375_s29 }
  0x91   : > { %s1532_s11 = scalar_lea.hbm %s1883_s23, 256  ;;  %s1537_s20 = scalar_lea.hbm %s2423_s1, 512 }
  0x92   : > { %p1533_p0 = scmp.ne.s32.totalorder %s1883_s23, %s1532_s11  ;;  %p1538_p6 = scmp.lt.u32.totalorder %s1883_s23, %s2423_s1 }
  0x93   : > { %p1539_p10 = scmp.lt.u32.totalorder %s1537_s20, %s1532_s11  ;;  %p1541_p7 = scmp.lt.u32.totalorder %s1532_s11, %s1883_s23 }
  0x94   : > { %p1535_p8 = pnand %p1533_p0, %p1504_p9 }
  0x95   : > { %p1540_p3 = por %p1539_p10, %p1538_p6 }
  0x96   : > { %p1536_p13 = pneg %p1535_p8 }
  0x97   : > { %p1542_p12 = por %p1541_p7, %p1540_p3 }
  0x99   : > { %p1543_p2 = pnand %p1542_p12, %p1536_p13 }
  0x9b   : > { %1546 = shalt.err (!%p1543_p2)
}
  0x9c   : > { %s1547_s28 = scalar_lea.vmem %s376_s29, 256  ;;  %s1648_s12 = smov [#allocation5]  }
  0x9d   : > { %p1548_p1 = scmp.ne.s32.totalorder %s376_s29, %s1547_s28  ;;  %s1552_s25 = sshll.u32 %s1648_s12, 4  ;;  %s1553_s25 = int_to_ptr.vmem [resolvable:$false] %s1552_s25 }
  0x9e   : > { %s1554_s24 = scalar_lea.vmem %s1553_s25, 512  ;;  %p1555_p8 = scmp.lt.s32.totalorder %s376_s29, %s1553_s25 }
  0x9f   : > { %p1550_p4 = pnand %p1548_p1, %p1504_p9  ;;  %p1556_p5 = scmp.lt.s32.totalorder %s1554_s24, %s1547_s28 }
  0xa1   : > { %p1551_p0 = pneg %p1550_p4  ;;  %p1557_p6 = por %p1556_p5, %p1555_p8 }
  0xa3   : > { %p1558_p10 = pnand %p1557_p6, %p1551_p0 }
  0xa5   : > { %1561 = shalt.err (!%p1558_p10)
}
  0xa6   : > { %1357 = dma.hbm_to_vmem [thread:$0]  (!%p1874_p11), %s1883_s23, 256, %s376_s29, %s364_s30  }
  0xa7   : > { %p2458_p13 = scmp.ne.s32.totalorder %s2449_s21, 0 }
  0xa8   : > { %s1934_s2 = sand.u32 (!%p2458_p13), 1, %s1632_s14   ;;  %p2459_p5 = scmp.ne.s32.totalorder (!%p2458_p13), %s2446_s19, 0 }
  0xa9   : > { %384 = sbr.rel (%p2458_p13) target bundleno = 1202 (0x4b2), region = 60  ;;  %s1937_s6 = sshll.u32 (!%p2458_p13), %s1934_s2, 4 }
  0xaa   : > { %s387_s11 = scalar_lea.sflag (!%p2458_p13), [#allocation3], %s1934_s2  ;;  %s390_s18 = scalar_lea.vmem (!%p2458_p13), [#allocation2], %s1937_s6 }
  0xb0   : > { %1607 = dma.done.wait (%p2459_p5), %s387_s11, 256  }
  0xb1   : > { %1609 = vsyncadd (%p2459_p5), %s387_s11, 4294967040  ;;  %s395_s21 = sand.u32 1, %s1736_s17   ;;  %s399_s23 = scalar_lea.vmem [#allocation5], %s1937_s6 }
  0xb2   : > { %s396_s27 = scalar_lea.sflag [#allocation6], %s395_s21 }
  0xb3   : > { %1611 = dma.done.wait (%p2459_p5), %s396_s27, 256  }
  0xb4   : > { %1613 = vsyncadd (%p2459_p5), %s396_s27, 4294967040  ;;  %p2460_p11 = scmp.eq.s32.totalorder %s1736_s17, 0 }
  0xb6   : > { %1615 = dma.done.wait (%p2460_p11), [#allocation6], 128   ;;  %p2461_p9 = pmov %p2460_p11 }
  0xb8   : > { %1617 = vsyncadd (%p2461_p9), [#allocation6], 4294967168  ;;  %p2462_p3 = pmov %p2461_p9 }
  0xba   : > { %1619 = dma.done.wait (%p2462_p3), [#allocation9], 384   ;;  %p2463_p7 = pmov %p2462_p3 }
  0xbb   : > { %v459_v0 = vlaneseq  ;;  %v1649_v1 = vmov 0.0   ;;  %v454_v5 = vld [vmem:[%s390_s18 + $0x8] sm:$0xff]  ;;  %v457_v6 = vld [vmem:[#allocation7] sm:$0x3]  ;;  %v472_v7 = vld [vmem:[#allocation7 + $0x2] sm:$0x3] }
  0xbc   : > { %1621 = vsyncadd (%p2463_p7), [#allocation9], 4294966912  ;;  %587 = vmatprep.mubr.f32.mxu0 %v1649_v1  ;;  %v453_v10 = vld [vmem:[%s390_s18] sm:$0xff]  ;;  %s1650_s19 = smov 17   ;;  %v1980_v24 = vld [vmem:[%s399_s23 + $0x8] sm:$0xff]  ;;  %s1651_s29 = smov 16  }
  0xbd   : > { %v460_v2 = vshrl.u32 %v459_v0, 7  ;;  %v487_v13 = vld [vmem:[#allocation7 + $0x4] sm:$0x3]  ;;  %v502_v14 = vld [vmem:[#allocation7 + $0x6] sm:$0x3]  ;;  %600 = vrot.lane.b32.xlu1 %v1980_v24, %s1650_s19  ;;  %v516_v33 = vld [vmem:[#allocation8] sm:$0xff] }
  0xbe   : > { %v1974_v19 = vld [vmem:[%s399_s23] sm:$0xff]  ;;  %vm519_vm0 = vcmask 261120   ;;  %s1652_s30 = smov 15   ;;  %s1653_s13 = smov 1   ;;  %v518_v38 = vld [vmem:[%s2426_s4 + $0x8] sm:$0xff]  ;;  %v595_v40 = vld [vmem:[#allocation10 + $0x8] sm:$0xff] }
  0xbf   : > { %v1960_v3 = vsub.s32 1, %v460_v2  ;;  %v1962_v4 = vsub.s32 0, %v460_v2  ;;  %596 = vrot.lane.b32.xlu0 %v1974_v19, %s1650_s19  ;;  %v517_v34 = vld [vmem:[%s2426_s4] sm:$0xff]  ;;  %s1654_s3 = smov 127   ;;  %s1655_s28 = smov 113   ;;  %vm860_vm1 = vcmask 130048  }
  0xc0   : > { %s1656_s24 = smov 112   ;;  %s1657_s11 = smov 111   ;;  %1253 = vmatprep.mubr.msk.f32.mxu1 %vm860_vm1, %v595_v40  ;;  %v854_v41 = vld [vmem:[%s2429_s7] sm:$0xff]  ;;  %v1658_v42 = vmov 0   ;;  %v2068_v57 = vand.u32 127, %v459_v0  ;;  %vm1010_vm10 = vcmask 588800  }
  0xc1   : > { %v466_v8 = vrot.slane %v457_v6, %v1960_v3  ;;  %v481_v9 = vrot.slane %v472_v7, %v1960_v3  ;;  %v462_v11 = vrot.slane %v457_v6, %v1962_v4  ;;  %v477_v12 = vrot.slane %v472_v7, %v1962_v4  ;;  %1417 = vset.pattern.permute.xlu0 %v1658_v42  ;;  %v611_v60 = vld [vmem:[%s2427_s5] sm:$0x3]  ;;  %v1245_v62 = vld [vmem:[%s2427_s5 + $0x2] sm:$0x3]  ;;  %s2465_s12 = sld [smem:[#allocation23_spill]]  ;;  %s1090_s18 = scalar_lea.sflag [#allocation4], %s1934_s2 }
  0xc2   : > { %v496_v15 = vrot.slane %v487_v13, %v1960_v3  ;;  %v511_v16 = vrot.slane %v502_v14, %v1960_v3  ;;  %v492_v17 = vrot.slane %v487_v13, %v1962_v4  ;;  %v507_v18 = vrot.slane %v502_v14, %v1962_v4  ;;  %p2466_p2 = scmp.ne.s32.totalorder %s2456_s10, 0 }
  0xc3   : > { %v470_v20 = vmul.f32 %v466_v8, %v454_v5  ;;  %v485_v21 = vmul.f32 %v481_v9, %v454_v5  ;;  %v469_v22 = vmul.f32 %v462_v11, %v453_v10  ;;  %v484_v23 = vmul.f32 %v477_v12, %v453_v10  ;;  %627 = vrot.lane.b32.xlu0 %v1974_v19, %s1651_s29  ;;  %v1246_v9 = vld [vmem:[%s2427_s5 + $0x4] sm:$0x3] }
  0xc4   : > { %v500_v25 = vmul.f32 %v496_v15, %v454_v5  ;;  %v515_v26 = vmul.f32 %v511_v16, %v454_v5  ;;  %v499_v27 = vmul.f32 %v492_v17, %v453_v10  ;;  %v514_v28 = vmul.f32 %v507_v18, %v453_v10 }
  0xc5   : > { %v1263_v29 = vpack.c.bf16 %v485_v21, %v470_v20  ;;  %v1265_v30 = vpack.c.bf16 %v484_v23, %v469_v22  ;;  %vm606_vm2 = vcmp.lt.s32.totalorder %v2068_v57, 17  ;;  %v2084_v63 = vrot.slane %v611_v60, %v1962_v4 }
  0xc6   : > { %v1267_v31 = vpack.c.bf16 %v515_v26, %v500_v25  ;;  %v1269_v32 = vpack.c.bf16 %v514_v28, %v499_v27  ;;  %vm635_vm3 = vcmp.lt.s32.totalorder %v2068_v57, 16  ;;  %v2097_v6 = vrot.slane %v1245_v62, %v1962_v4  ;;  %v1247_v27 = vld [vmem:[%s2427_s5 + $0x6] sm:$0x3] }
  0xc7   : > { %1264 = vmatprep.subr.bf16.mxu0 %v1263_v29  ;;  %631 = vrot.lane.b32.xlu0 %v1980_v24, %s1651_s29  ;;  %v2100_v8 = vrot.slane %v1245_v62, %v1960_v3  ;;  %vm665_vm4 = vcmp.lt.s32.totalorder %v2068_v57, 15  ;;  %v2119_v18 = vrot.slane %v1246_v9, %v1962_v4  ;;  %v2125_v26 = vrot.slane %v1246_v9, %v1960_v3 }
  0xc8   : > { %1266 = vmatpush1.bf16.msra.mxu0 %v1265_v30  ;;  %v1248_v30 = vld [vmem:[%s2427_s5 + $0x8] sm:$0x3]  ;;  %vm695_vm5 = vcmp.lt.s32.totalorder %v2068_v57, 1  ;;  %vm742_vm6 = vcmp.lt.s32.totalorder %v2068_v57, 127  ;;  %vm772_vm7 = vcmp.lt.s32.totalorder %v2068_v57, 113  ;;  %vm802_vm8 = vcmp.lt.s32.totalorder %v2068_v57, 112 }
  0xc9   : > { %1268 = vmatprep.subr.bf16.mxu0 %v1267_v31  ;;  %v2149_v42 = vrot.slane %v1248_v30, %v1960_v3  ;;  %vm832_vm9 = vcmp.lt.s32.totalorder %v2068_v57, 111 }
  0xcb   : > { %657 = vrot.lane.b32.xlu0 %v1974_v19, %s1652_s30 }
  0xcc   : > { %1270 = vmatpush1.bf16.msra.mxu0 %v1269_v32 }
  0xcf   : > { %1244 = vmatmul.mubr.msk.f32.vlgmr.msra.gmra.mrb[0].mxu0 %vm519_vm0, %v516_v33  ;;  %661 = vrot.lane.b32.xlu0 %v1980_v24, %s1652_s30 }
  0xd0   : > { %1078 = vmatprep.mubr.f32.mxu0 %v1649_v1  ;;  %v2089_v1 = vrot.slane %v611_v60, %v1960_v3 }
  0xd3   : > { %687 = vrot.lane.b32.xlu0 %v1974_v19, %s1653_s13 }
  0xd7   : > { %691 = vrot.lane.b32.xlu0 %v1980_v24, %s1653_s13 }
 0x12f   : > { %v601_v49 = vpop.permute.xlu1 %600 }
 0x131   : > { %v597_v43 = vpop.permute.xlu0 %596 }
 0x132   : > { %v609_v0 = vsel %vm606_vm2, %v601_v49, %v597_v43  ;;  %v607_v5 = vsel %vm606_vm2, %v597_v43, %v601_v49 }
 0x133   : > { %v623_v10 = vmul.f32 %v2084_v63, %v609_v0  ;;  %v624_v15 = vmul.f32 %v2089_v1, %v607_v5 }
 0x135   : > { %v628_v44 = vpop.permute.xlu0 %627 }
 0x139   : > { %v632_v45 = vpop.permute.xlu0 %631 }
 0x13a   : > { %v638_v13 = vsel %vm635_vm3, %v632_v45, %v628_v44  ;;  %v636_v17 = vsel %vm635_vm3, %v628_v44, %v632_v45  ;;  %v2153_v44 = vrot.slane %v1247_v27, %v1960_v3 }
 0x13b   : > { %v653_v25 = vmul.f32 %v2097_v6, %v638_v13  ;;  %v654_v31 = vmul.f32 %v2100_v8, %v636_v17 }
 0x13d   : > { %v658_v46 = vpop.permute.xlu0 %657 }
 0x141   : > { %v662_v47 = vpop.permute.xlu0 %661 }
 0x142   : > { %v668_v32 = vsel %vm665_vm4, %v662_v47, %v658_v46 }
 0x143   : > { %v683_v43 = vmul.f32 %v2119_v18, %v668_v32 }
 0x145   : > { %v2057_v48 = vpop.permute.xlu0 %687 }
 0x149   : > { %v2059_v50 = vpop.permute.xlu0 %691 }
 0x14a   : > { %v698_v49 = vsel %vm695_vm5, %v2059_v50, %v2057_v48  ;;  %v696_v62 = vsel %vm695_vm5, %v2057_v48, %v2059_v50  ;;  %v731_v48 = vmul.f32 %v2149_v42, %v1980_v24 }
 0x14b   : > { %v714_v50 = vmul.f32 %v2153_v44, %v696_v62 }
 0x1a2   : > { %v589_v35 = vpop.f32.mrb[0].mxu0 }
 0x1a3   : > { %v1999_v36 = vadd.f32 %v589_v35, %v517_v34  ;;  %v591_v37 = vpop.f32.mrb[1].mxu0  ;;  %v666_v35 = vsel %vm665_vm4, %v658_v46, %v662_v47 }
 0x1a4   : > { %v2028_v39 = vadd.f32 %v591_v37, %v518_v38  ;;  %v2146_v37 = vrot.slane %v1247_v27, %v1962_v4  ;;  %v684_v47 = vmul.f32 %v2125_v26, %v666_v35 }
 0x1a5   : > { %629 = vrot.lane.b32.xlu1 %v1999_v36, %s1651_s29  ;;  %598 = vrot.lane.b32.xlu0 %v1999_v36, %s1650_s19 }
 0x1a6   : > { %v713_v9 = vmul.f32 %v2146_v37, %v698_v49 }
 0x1a9   : > { %659 = vrot.lane.b32.xlu1 %v1999_v36, %s1652_s30  ;;  %734 = vrot.lane.b32.xlu0 %v1974_v19, %s1654_s3 }
 0x1ad   : > { %689 = vrot.lane.b32.xlu1 %v1999_v36, %s1653_s13  ;;  %738 = vrot.lane.b32.xlu0 %v1980_v24, %s1654_s3 }
 0x1b1   : > { %736 = vrot.lane.b32.xlu1 %v1999_v36, %s1654_s3  ;;  %764 = vrot.lane.b32.xlu0 %v1974_v19, %s1655_s28 }
 0x1b5   : > { %766 = vrot.lane.b32.xlu1 %v1999_v36, %s1655_s28  ;;  %768 = vrot.lane.b32.xlu0 %v1980_v24, %s1655_s28 }
 0x1b9   : > { %796 = vrot.lane.b32.xlu1 %v1999_v36, %s1656_s24  ;;  %794 = vrot.lane.b32.xlu0 %v1974_v19, %s1656_s24 }
 0x1bd   : > { %602 = vrot.lane.b32.xlu1 %v2028_v39, %s1650_s19  ;;  %798 = vrot.lane.b32.xlu0 %v1980_v24, %s1656_s24 }
 0x1c1   : > { %633 = vrot.lane.b32.xlu1 %v2028_v39, %s1651_s29  ;;  %824 = vrot.lane.b32.xlu0 %v1974_v19, %s1657_s11 }
 0x1c5   : > { %663 = vrot.lane.b32.xlu1 %v2028_v39, %s1652_s30  ;;  %828 = vrot.lane.b32.xlu0 %v1980_v24, %s1657_s11 }
 0x1c9   : > { %693 = vrot.lane.b32.xlu1 %v2028_v39, %s1653_s13  ;;  %857 = vperm.xlu0 %1417, %v854_v41  }
 0x1cd   : > { %826 = vrot.lane.b32.xlu1 %v1999_v36, %s1657_s11 }
 0x1d1   : > { %740 = vrot.lane.b32.xlu1 %v2028_v39, %s1654_s3 }
 0x1d5   : > { %770 = vrot.lane.b32.xlu1 %v2028_v39, %s1655_s28 }
 0x1d9   : > { %800 = vrot.lane.b32.xlu1 %v2028_v39, %s1656_s24 }
 0x1dd   : > { %830 = vrot.lane.b32.xlu1 %v2028_v39, %s1657_s11 }
 0x217   : > { %v630_v51 = vpop.permute.xlu1 %629  ;;  %v599_v53 = vpop.permute.xlu0 %598 }
 0x21b   : > { %v660_v52 = vpop.permute.xlu1 %659  ;;  %v2063_v55 = vpop.permute.xlu0 %734 }
 0x21f   : > { %v2061_v54 = vpop.permute.xlu1 %689  ;;  %v2072_v59 = vpop.permute.xlu0 %738 }
 0x220   : > { %v743_v27 = vsel %vm742_vm6, %v2063_v55, %v2072_v59 }
 0x223   : > { %v2065_v56 = vpop.permute.xlu1 %736  ;;  %v2091_v2 = vpop.permute.xlu0 %764 }
 0x227   : > { %v2070_v58 = vpop.permute.xlu1 %766  ;;  %v2121_v23 = vpop.permute.xlu0 %768 }
 0x22b   : > { %v2078_v61 = vpop.permute.xlu1 %796  ;;  %v2166_v60 = vpop.permute.xlu0 %794 }
 0x22f   : > { %v603_v7 = vpop.permute.xlu1 %602 }
 0x230   : > { %v608_v11 = vsel %vm606_vm2, %v599_v53, %v603_v7  ;;  %v610_v12 = vsel %vm606_vm2, %v603_v7, %v599_v53 }
 0x231   : > { %v625_v14 = vmul.f32 %v2084_v63, %v610_v12  ;;  %v626_v16 = vmul.f32 %v2089_v1, %v608_v11 }
 0x233   : > { %v634_v20 = vpop.permute.xlu1 %633  ;;  %v1271_v21 = vpack.c.bf16 %v626_v16, %v624_v15  ;;  %v1273_v22 = vpack.c.bf16 %v625_v14, %v623_v10  ;;  %v733_v14 = vmul.f32 %v2149_v42, %v2028_v39  ;;  %v1249_v15 = vld [vmem:[%s2427_s5 + $0xa] sm:$0x3] }
 0x234   : > { %v637_v28 = vsel %vm635_vm3, %v630_v51, %v634_v20  ;;  %v639_v29 = vsel %vm635_vm3, %v634_v20, %v630_v51  ;;  %v799_v20 = vpop.permute.xlu0 %798  ;;  %v2200_v39 = vrot.slane %v1249_v15, %v1962_v4 }
 0x235   : > { %v655_v33 = vmul.f32 %v2097_v6, %v639_v29  ;;  %v656_v34 = vmul.f32 %v2100_v8, %v637_v28  ;;  %1272 = vmatprep.subr.bf16.mxu1 %v1271_v21 }
 0x236   : > { %1274 = vmatpush1.bf16.msra.mxu1 %v1273_v22  ;;  %v2203_v22 = vrot.slane %v1249_v15, %v1960_v3 }
 0x237   : > { %v664_v38 = vpop.permute.xlu1 %663  ;;  %v1275_v40 = vpack.c.bf16 %v656_v34, %v654_v31  ;;  %v1277_v41 = vpack.c.bf16 %v655_v33, %v653_v25  ;;  %v1287_v25 = vpack.c.bf16 %v733_v14, %v731_v48 }
 0x238   : > { %v667_v45 = vsel %vm665_vm4, %v660_v52, %v664_v38  ;;  %v669_v46 = vsel %vm665_vm4, %v664_v38, %v660_v52  ;;  %v2173_v52 = vrot.slane %v1248_v30, %v1962_v4  ;;  %v1251_v38 = vld [vmem:[%s2427_s5 + $0xe] sm:$0x3] }
 0x239   : > { %v685_v51 = vmul.f32 %v2119_v18, %v669_v46  ;;  %v686_v53 = vmul.f32 %v2125_v26, %v667_v45  ;;  %1276 = vmatprep.subr.bf16.mxu1 %v1275_v40  ;;  %v825_v40 = vpop.permute.xlu0 %824  ;;  %v2249_v49 = vrot.slane %v1251_v38, %v1960_v3 }
 0x23a   : > { %1278 = vmatpush1.bf16.msra.mxu1 %v1277_v41  ;;  %v732_v21 = vmul.f32 %v2173_v52, %v1999_v36  ;;  %v745_v36 = vsel %vm742_vm6, %v2072_v59, %v2063_v55  ;;  %v760_v59 = vmul.f32 %v2200_v39, %v743_v27  ;;  %v773_v41 = vsel %vm772_vm7, %v2091_v2, %v2121_v23 }
 0x23b   : > { %v694_v0 = vpop.permute.xlu1 %693  ;;  %v1279_v5 = vpack.c.bf16 %v686_v53, %v684_v47  ;;  %v1281_v7 = vpack.c.bf16 %v685_v51, %v683_v43  ;;  %v761_v33 = vmul.f32 %v2203_v22, %v745_v36  ;;  %v2246_v47 = vrot.slane %v1251_v38, %v1962_v4 }
 0x23c   : > { %v697_v10 = vsel %vm695_vm5, %v2061_v54, %v694_v0  ;;  %v699_v11 = vsel %vm695_vm5, %v694_v0, %v2061_v54  ;;  %v730_v54 = vmul.f32 %v2173_v52, %v1974_v19  ;;  %v1250_v19 = vld [vmem:[%s2427_s5 + $0xc] sm:$0x3] }
 0x23d   : > { %v715_v12 = vmul.f32 %v2146_v37, %v699_v11  ;;  %v716_v13 = vmul.f32 %v2153_v44, %v697_v10  ;;  %1280 = vmatprep.subr.bf16.mxu1 %v1279_v5  ;;  %v2218_v30 = vrot.slane %v1250_v19, %v1962_v4  ;;  %v2221_v31 = vrot.slane %v1250_v19, %v1960_v3  ;;  %v1252_v5 = vld [vmem:[%s2427_s5 + $0x10] sm:$0x3]  ;;  %v829_v10 = vpop.permute.xlu0 %828 }
 0x23e   : > { %1282 = vmatpush1.bf16.msra.mxu1 %v1281_v7  ;;  %v1289_v29 = vpack.c.bf16 %v732_v21, %v730_v54  ;;  %v803_v7 = vsel %vm802_vm8, %v2166_v60, %v799_v20 }
 0x23f   : > { %v2195_v24 = vpop.permute.xlu1 %826  ;;  %v1283_v16 = vpack.c.bf16 %v716_v13, %v714_v50  ;;  %v1285_v17 = vpack.c.bf16 %v715_v12, %v713_v9  ;;  %v2278_v13 = vrot.slane %v1252_v5, %v1962_v4  ;;  %v820_v14 = vmul.f32 %v2246_v47, %v803_v7 }
 0x241   : > { %1284 = vmatprep.subr.bf16.mxu1 %v1283_v16 }
 0x242   : > { %1286 = vmatpush1.bf16.msra.mxu1 %v1285_v17  ;;  %v833_v17 = vsel %vm832_vm9, %v825_v40, %v829_v10 }
 0x243   : > { %v741_v28 = vpop.permute.xlu1 %740  ;;  %1288 = vmatprep.subr.bf16.mxu1 %v1287_v25  ;;  %v850_v25 = vmul.f32 %v2278_v13, %v833_v17 }
 0x244   : > { %v744_v32 = vsel %vm742_vm6, %v2065_v56, %v741_v28  ;;  %v746_v55 = vsel %vm742_vm6, %v741_v28, %v2065_v56  ;;  %v775_v56 = vsel %vm772_vm7, %v2121_v23, %v2091_v2  ;;  %v790_v23 = vmul.f32 %v2218_v30, %v773_v41  ;;  %v1004_v41 = vld [vmem:[%s2431_s9] sm:$0xff] }
 0x245   : > { %v762_v34 = vmul.f32 %v2200_v39, %v744_v32  ;;  %v763_v35 = vmul.f32 %v2203_v22, %v746_v55  ;;  %v791_v53 = vmul.f32 %v2221_v31, %v775_v56  ;;  %v594_v55 = vld [vmem:[#allocation10] sm:$0xff] }
 0x246   : > { %1290 = vmatpush1.bf16.msra.mxu1 %v1289_v29 }
 0x247   : > { %v771_v43 = vpop.permute.xlu1 %770  ;;  %v1291_v45 = vpack.c.bf16 %v763_v35, %v761_v33  ;;  %v1293_v46 = vpack.c.bf16 %v762_v34, %v760_v59 }
 0x248   : > { %v774_v51 = vsel %vm772_vm7, %v2070_v58, %v771_v43  ;;  %v776_v2 = vsel %vm772_vm7, %v771_v43, %v2070_v58  ;;  %v805_v58 = vsel %vm802_vm8, %v799_v20, %v2166_v60  ;;  %v2281_v60 = vrot.slane %v1252_v5, %v1960_v3  ;;  %v858_v59 = vpop.permute.xlu0 %857 }
 0x249   : > { %v792_v62 = vmul.f32 %v2218_v30, %v774_v51  ;;  %v793_v0 = vmul.f32 %v2221_v31, %v776_v2  ;;  %1292 = vmatprep.subr.bf16.mxu1 %v1291_v45  ;;  %v821_v15 = vmul.f32 %v2249_v49, %v805_v58 }
 0x24a   : > { %1294 = vmatpush1.bf16.msra.mxu1 %v1293_v46 }
 0x24b   : > { %v801_v9 = vpop.permute.xlu1 %800  ;;  %v1295_v11 = vpack.c.bf16 %v793_v0, %v791_v53  ;;  %v1297_v48 = vpack.c.bf16 %v792_v62, %v790_v23 }
 0x24c   : > { %v804_v50 = vsel %vm802_vm8, %v2078_v61, %v801_v9  ;;  %v806_v12 = vsel %vm802_vm8, %v801_v9, %v2078_v61  ;;  %v835_v61 = vsel %vm832_vm9, %v829_v10, %v825_v40 }
 0x24d   : > { %v822_v54 = vmul.f32 %v2246_v47, %v804_v50  ;;  %v823_v16 = vmul.f32 %v2249_v49, %v806_v12  ;;  %1296 = vmatprep.subr.bf16.mxu1 %v1295_v11  ;;  %v851_v27 = vmul.f32 %v2281_v60, %v835_v61 }
 0x24e   : > { %1298 = vmatpush1.bf16.msra.mxu1 %v1297_v48 }
 0x24f   : > { %v831_v4 = vpop.permute.xlu1 %830  ;;  %v1299_v20 = vpack.c.bf16 %v823_v16, %v821_v15  ;;  %v1301_v3 = vpack.c.bf16 %v822_v54, %v820_v14 }
 0x250   : > { %v834_v21 = vsel %vm832_vm9, %v2195_v24, %v831_v4  ;;  %v836_v19 = vsel %vm832_vm9, %v831_v4, %v2195_v24 }
 0x251   : > { %v852_v36 = vmul.f32 %v2278_v13, %v834_v21  ;;  %v853_v28 = vmul.f32 %v2281_v60, %v836_v19  ;;  %1300 = vmatprep.subr.bf16.mxu1 %v1299_v20 }
 0x252   : > { %1302 = vmatpush1.bf16.msra.mxu1 %v1301_v3 }
 0x253   : > { %v1303_v29 = vpack.c.bf16 %v853_v28, %v851_v27  ;;  %v1305_v32 = vpack.c.bf16 %v852_v36, %v850_v25 }
 0x255   : > { %1304 = vmatprep.subr.bf16.mxu1 %v1303_v29 }
 0x256   : > { %1306 = vmatpush1.bf16.msra.mxu1 %v1305_v32 }
 0x259   : > { %929 = vmatmul.mubr.f32.vlgmr.msra.gmra.mrb[0].mxu1 %v594_v55 }
 0x32c   : > { %v930_v33 = vpop.f32.mrb[0].mxu1 }
 0x32d   : > { %v931_v34 = vadd.f32 %v930_v33, %v858_v59  ;;  %v932_v24 = vpop.f32.mrb[1].mxu1 }
 0x32e   : > { %v933_v38 = vadd.f32 %v932_v24, %v858_v59 }
 0x32f   : > { %v935_v35 = vmax.f32 %v931_v34, 0.0 }
 0x330   : > { %v936_v40 = vmax.f32 %v933_v38, 0.0 }
 0x331   : > { %946 = vrot.lane.b32.xlu0 %v935_v35, %s1651_s29  ;;  %938 = vrot.lane.b32.xlu1 %v935_v35, %s1650_s19  ;;  %v970_v19 = vmul.f32 %v935_v35, %v2173_v52 }
 0x335   : > { %954 = vrot.lane.b32.xlu0 %v935_v35, %s1652_s30  ;;  %940 = vrot.lane.b32.xlu1 %v936_v40, %s1650_s19 }
 0x339   : > { %962 = vrot.lane.b32.xlu0 %v935_v35, %s1653_s13  ;;  %948 = vrot.lane.b32.xlu1 %v936_v40, %s1651_s29 }
 0x33d   : > { %972 = vrot.lane.b32.xlu0 %v935_v35, %s1654_s3  ;;  %956 = vrot.lane.b32.xlu1 %v936_v40, %s1652_s30 }
 0x341   : > { %980 = vrot.lane.b32.xlu0 %v935_v35, %s1655_s28  ;;  %964 = vrot.lane.b32.xlu1 %v936_v40, %s1653_s13  ;;  %s2464_s13 = sld [smem:[#allocation22_spill]] }
 0x345   : > { %988 = vrot.lane.b32.xlu0 %v935_v35, %s1656_s24  ;;  %974 = vrot.lane.b32.xlu1 %v936_v40, %s1654_s3  ;;  %s1262_s3 = sshll.u32 %s1736_s17, 8  ;;  %s1659_s17 = smov [#allocation11]  }
 0x346   : > { %s2378_s25 = scalar_lea.hbm %s2465_s12, %s1262_s3 }
 0x349   : > { %996 = vrot.lane.b32.xlu0 %v935_v35, %s1657_s11  ;;  %982 = vrot.lane.b32.xlu1 %v936_v40, %s1655_s28  ;;  %s452_s28 = scalar_lea.vmem [#allocation11], %s1937_s6  ;;  %s1566_s6 = sshll.u32 %s1659_s17, 4  ;;  %s1567_s6 = int_to_ptr.vmem [resolvable:$false] %s1566_s6 }
 0x34a   : > { %s1568_s27 = scalar_lea.vmem %s1567_s6, 512 }
 0x34d   : > { %1007 = vperm.xlu0 %1417, %v1004_v41   ;;  %990 = vrot.lane.b32.xlu1 %v936_v40, %s1656_s24  ;;  %s1104_s24 = sshll.u32 %s452_s28, 4  ;;  %s2380_s24 = int_to_ptr.vmem [resolvable:$true] %s1104_s24 }
 0x34e   : > { %s1562_s21 = scalar_lea.vmem %s2380_s24, 256  ;;  %p1569_p0 = scmp.lt.s32.totalorder %s2380_s24, %s1567_s6 }
 0x34f   : > { %p1563_p12 = scmp.ne.s32.totalorder %s2380_s24, %s1562_s21  ;;  %p1570_p8 = scmp.lt.s32.totalorder %s1568_s27, %s1562_s21 }
 0x351   : > { %998 = vrot.lane.b32.xlu1 %v936_v40, %s1657_s11  ;;  %p1564_p1 = pnand %p1563_p12, %p2466_p2  ;;  %p1571_p6 = por %p1570_p8, %p1569_p0 }
 0x353   : > { %p1565_p4 = pneg %p1564_p1 }
 0x355   : > { %p1572_p10 = pnand %p1571_p6, %p1565_p4 }
 0x3a3   : > { %v947_v56 = vpop.permute.xlu0 %946  ;;  %v939_v43 = vpop.permute.xlu1 %938 }
 0x3a7   : > { %v955_v45 = vpop.permute.xlu0 %954  ;;  %v941_v46 = vpop.permute.xlu1 %940 }
 0x3a8   : > { %v942_v51 = vsel %vm606_vm2, %v939_v43, %v941_v46  ;;  %v943_v2 = vsel %vm606_vm2, %v941_v46, %v939_v43 }
 0x3a9   : > { %v944_v5 = vmul.f32 %v943_v2, %v2084_v63  ;;  %v945_v7 = vmul.f32 %v942_v51, %v2089_v1 }
 0x3ab   : > { %v963_v23 = vpop.permute.xlu0 %962  ;;  %v949_v53 = vpop.permute.xlu1 %948 }
 0x3ac   : > { %v950_v62 = vsel %vm635_vm3, %v947_v56, %v949_v53  ;;  %v951_v0 = vsel %vm635_vm3, %v949_v53, %v947_v56 }
 0x3ad   : > { %v952_v58 = vmul.f32 %v951_v0, %v2097_v6  ;;  %v953_v9 = vmul.f32 %v950_v62, %v2100_v8 }
 0x3af   : > { %v1309_v10 = vpack.c.bf16 %v952_v58, %v944_v5  ;;  %v957_v11 = vpop.permute.xlu1 %956  ;;  %v1307_v48 = vpack.c.bf16 %v953_v9, %v945_v7  ;;  %v973_v50 = vpop.permute.xlu0 %972 }
 0x3b0   : > { %v958_v12 = vsel %vm665_vm4, %v955_v45, %v957_v11  ;;  %v959_v14 = vsel %vm665_vm4, %v957_v11, %v955_v45 }
 0x3b1   : > { %1308 = vmatprep.subr.bf16.mxu0 %v1307_v48  ;;  %v960_v6 = vmul.f32 %v959_v14, %v2119_v18  ;;  %v961_v8 = vmul.f32 %v958_v12, %v2125_v26 }
 0x3b2   : > { %1310 = vmatpush1.bf16.msra.mxu0 %v1309_v10 }
 0x3b3   : > { %v965_v15 = vpop.permute.xlu1 %964  ;;  %v981_v17 = vpop.permute.xlu0 %980 }
 0x3b4   : > { %v966_v63 = vsel %vm695_vm5, %v963_v23, %v965_v15  ;;  %v967_v1 = vsel %vm695_vm5, %v965_v15, %v963_v23 }
 0x3b5   : > { %v968_v54 = vmul.f32 %v967_v1, %v2146_v37  ;;  %v969_v16 = vmul.f32 %v966_v63, %v2153_v44  ;;  %v971_v37 = vmul.f32 %v936_v40, %v2149_v42 }
 0x3b7   : > { %v1313_v61 = vpack.c.bf16 %v968_v54, %v960_v6  ;;  %v975_v4 = vpop.permute.xlu1 %974  ;;  %v1311_v20 = vpack.c.bf16 %v969_v16, %v961_v8  ;;  %v989_v36 = vpop.permute.xlu0 %988 }
 0x3b8   : > { %v976_v3 = vsel %vm742_vm6, %v973_v50, %v975_v4  ;;  %v977_v21 = vsel %vm742_vm6, %v975_v4, %v973_v50 }
 0x3b9   : > { %v978_v18 = vmul.f32 %v976_v3, %v2200_v39  ;;  %v979_v26 = vmul.f32 %v977_v21, %v2203_v22  ;;  %1312 = vmatprep.subr.bf16.mxu0 %v1311_v20 }
 0x3ba   : > { %1314 = vmatpush1.bf16.msra.mxu0 %v1313_v61 }
 0x3bb   : > { %v1317_v44 = vpack.c.bf16 %v978_v18, %v970_v19  ;;  %v983_v25 = vpop.permute.xlu1 %982  ;;  %v1315_v27 = vpack.c.bf16 %v979_v26, %v971_v37  ;;  %v997_v33 = vpop.permute.xlu0 %996 }
 0x3bc   : > { %v984_v28 = vsel %vm772_vm7, %v981_v17, %v983_v25  ;;  %v985_v29 = vsel %vm772_vm7, %v983_v25, %v981_v17 }
 0x3bd   : > { %1316 = vmatprep.subr.bf16.mxu0 %v1315_v27  ;;  %v986_v22 = vmul.f32 %v984_v28, %v2218_v30  ;;  %v987_v32 = vmul.f32 %v985_v29, %v2221_v31 }
 0x3be   : > { %1318 = vmatpush1.bf16.msra.mxu0 %v1317_v44 }
 0x3bf   : > { %v991_v52 = vpop.permute.xlu1 %990 }
 0x3c0   : > { %v992_v39 = vsel %vm802_vm8, %v989_v36, %v991_v52  ;;  %v993_v42 = vsel %vm802_vm8, %v991_v52, %v989_v36 }
 0x3c1   : > { %v994_v55 = vmul.f32 %v992_v39, %v2246_v47  ;;  %v995_v59 = vmul.f32 %v993_v42, %v2249_v49  ;;  %v937_v47 = vld [vmem:[%s2464_s13] sm:$0xff] }
 0x3c3   : > { %v1321_v34 = vpack.c.bf16 %v994_v55, %v986_v22  ;;  %v999_v24 = vpop.permute.xlu1 %998  ;;  %v1319_v35 = vpack.c.bf16 %v995_v59, %v987_v32 }
 0x3c4   : > { %v1001_v38 = vsel %vm832_vm9, %v999_v24, %v997_v33  ;;  %v1000_v40 = vsel %vm832_vm9, %v997_v33, %v999_v24 }
 0x3c5   : > { %v1003_v30 = vmul.f32 %v1001_v38, %v2281_v60  ;;  %1320 = vmatprep.subr.bf16.mxu0 %v1319_v35  ;;  %v1002_v31 = vmul.f32 %v1000_v40, %v2278_v13 }
 0x3c6   : > { %1322 = vmatpush1.bf16.msra.mxu0 %v1321_v34 }
 0x3c7   : > { %1030 = vmatprep.subr.mxu0 %v1003_v30 }
 0x3ca   : > { %1031 = vmatpush1.msra.mxu0 %v1002_v31 }
 0x3cb   : > { %1254 = vmatmul.mubr.msk.f32.vlgmr.msra.gmra.mrb[2].mxu0 %vm1010_vm10, %v937_v47 }
 0x3cc   : > { %v1008_v49 = vpop.permute.xlu0 %1007 }
 0x49e   : > { %v1080_v41 = vpop.f32.mrb[2].mxu0 }
 0x49f   : > { %v1081_v57 = vadd.f32 %v1080_v41, %v1008_v49  ;;  %v1082_v56 = vpop.f32.mrb[3].mxu0 }
 0x4a0   : > { %v1083_v60 = vadd.f32 %v1082_v56, %v1008_v49 }
 0x4a1   : > { %v1085_v43 = vmax.f32 %v1081_v57, 0.0 }
 0x4a2   : > { %v1086_v45 = vmax.f32 %v1083_v60, 0.0 }
 0x4a3   : > { %1087 = vst [vmem:[%s452_s28] sm:$0xff] %v1085_v43 }
 0x4a4   : > { %1088 = vst [vmem:[%s452_s28 + $0x8] sm:$0xff] %v1086_v45 }
 0x4a5   : > { %1575 = shalt.err (!%p1572_p10)
}
 0x4a6   : > { %s1576_s2 = scalar_lea.hbm %s2378_s25, 256  ;;  %s1580_s20 = scalar_lea.hbm %s2465_s12, 512 }
 0x4a7   : > { %p1577_p13 = scmp.ne.s32.totalorder %s2378_s25, %s1576_s2  ;;  %p1581_p9 = scmp.lt.u32.totalorder %s2378_s25, %s2465_s12 }
 0x4a8   : > { %p1582_p3 = scmp.lt.u32.totalorder %s1580_s20, %s1576_s2  ;;  %p1584_p12 = scmp.lt.u32.totalorder %s1576_s2, %s2378_s25 }
 0x4a9   : > { %p1578_p5 = pnand %p1577_p13, %p2466_p2 }
 0x4aa   : > { %p1583_p7 = por %p1582_p3, %p1581_p9 }
 0x4ab   : > { %p1579_p11 = pneg %p1578_p5 }
 0x4ac   : > { %p1585_p1 = por %p1584_p12, %p1583_p7 }
 0x4ae   : > { %p1586_p4 = pnand %p1585_p1, %p1579_p11 }
 0x4b0   : > { %1589 = shalt.err (!%p1586_p4)
}
 0x4b1   : > { %1339 = dma.vmem_to_hbm [thread:$0]  (%p2466_p2), %s2380_s24, 256, %s2378_s25, %s1090_s18  }
 0x4b2 PF: > { %s2467_s13 = sld [smem:[#allocation17_spill]]  ;;  %s2468_s3 = sld [smem:[#allocation18_spill]] }
 0x4b3   : > { %p2470_p8 = scmp.ge.s32.totalorder %s1640_s16, 2 }
 0x4b8   : > { %s1116_s28 = sand.u32 1, %s2467_s13   ;;  %p2469_p0 = scmp.ne.s32.totalorder %s2468_s3, 0 }
 0x4b9   : > { %s1117_s11 = scalar_lea.sflag [#allocation4], %s1116_s28 }
 0x4ba   : > { %p1359_p6 = pnand %p2470_p8, %p2469_p0 }
 0x4bc   : > { %1623 = dma.done.wait (!%p1359_p6), %s1117_s11, 256  }
 0x4bd   : > { %1625 = vsyncadd (!%p1359_p6), %s1117_s11, 4294967040  ;;  %p27_p10 = scmp.ge.s32.totalorder %s1846_s22, 4   ;;  %s2471_s13 = smov %s1632_s14 }
 0x4be   : > { %s2472_s14 = smov %s1636_s15  ;;  %s2473_s15 = smov %s1856_s8 }
 0x4bf   : > { %s2474_s16 = smov %s1846_s22  ;;  %29 = sbr.rel (!%p27_p10) target bundleno = 14 (0xe), region = 141 }
 0x4c6   :  { %1122 = vsyncpa [#allocation3], 1 }
 0x4c7   :  { %1124 = vsyncpa [#allocation3 + $0x1], 1 }
 0x4c8   :  { %1125 = vsyncpa [#allocation6], 1 }
 0x4c9   :  { %1127 = vsyncpa [#allocation6 + $0x1], 1 }
 0x4ca   :  { %1128 = vsyncpa [#allocation9], 1 }
 0x4cb   :  { %1129 = vsyncpa [#allocation4], 1 }
 0x4cc   :  { %1131 = vsyncpa [#allocation4 + $0x1], 1 }

</bundles_post_ra>
